<compile_context>
chip_gen: v6e
topology: v6e:2x2x1
jax: 0.10.0
libtpu: 0.0.40
codegen_flags: <defaults>
</compile_context>

<pallas_src>
import functools

import jax
import jax.numpy as jnp
from jax.experimental import pallas as pl
from jax.experimental.pallas import tpu as pltpu


# ----------------------------- fused Pallas kernel -----------------------------

def _clstm_kernel(tok_ref,            # (B*S, 1) int32  tokens, row = b*S + s
                  spos_ref,           # (B*S, 1) int32  in-sequence position s
                  wec_ref,            # (KMAX*V, FT)    bf16  embed folded into conv
                  bc_ref,             # (1, FT)         f32   stacked conv bias
                  *rest,              # (wx, wh, bg) per layer, wo, bo, out
                  B, S, KMAX, V, H, L):
    lstm_refs = rest[:3 * L]
    wo_ref, bo_ref, out_ref = rest[3 * L:]

    PAD = KMAX // 2
    G = 2 * H                          # per-gate width for fused [fwd | bwd] gates
    R = B * S
    mm = jnp.bfloat16                  # MXU operand dtype (accumulate in f32)

    # -- 1+2. embedding + multi-kernel conv + relu as ONE selector matmul -------
    # conv[(b,s), f] = sum_dk embed[tok[b, s+dk-PAD]] @ conv_w[dk, :, f]
    #               = sum_dk wec[dk*V + tok[b, s+dk-PAD], f]      (zero if invalid)
    # so build a 0/1 multi-hot selector with one lane-iota compare per tap.
    tok = tok_ref[...]                                        # (R, 1) int32
    spos = spos_ref[...]                                      # (R, 1) int32
    col = jax.lax.broadcasted_iota(jnp.int32, (R, KMAX * V), 1)
    hit = None
    for dk in range(KMAX):                                    # KMAX static: unrolled
        d = dk - PAD
        if d == 0:
            tsh = tok
        elif d > 0:                                           # tsh[r] = tok[r + d]
            tsh = jnp.concatenate(
                [tok[d:], jnp.full((d, 1), -1, jnp.int32)], axis=0)
        else:                                                 # tsh[r] = tok[r + d]
            tsh = jnp.concatenate(
                [jnp.full((-d, 1), -1, jnp.int32), tok[:R + d]], axis=0)
        # valid iff the tap stays inside this batch element's sequence
        valid = jnp.logical_and(spos + d >= 0, spos + d < S)
        otok = jnp.where(valid, tsh + dk * V, -1)             # column index or -1
        m = col == otok
        hit = m if hit is None else jnp.logical_or(hit, m)
    sel = hit.astype(jnp.float32).astype(mm)                  # exact 0/1 multi-hot
    conv = jnp.dot(sel, wec_ref[...],
                   preferred_element_type=jnp.float32) + bc_ref[...]
    xs = jnp.maximum(conv, 0.0)                               # (R, FT), rows b*S+s
    # self.dropout(embeds): identity (inference)

    # -- 3. bidirectional LSTM (recurrence over axis 0 = B, "LSTM batch" = S) ----
    T = B
    for layer in range(L):
        wx = lstm_refs[3 * layer][...]                        # (2*In, 4G) bf16
        wh = lstm_refs[3 * layer + 1][...]                    # (G,    4G) bf16
        bg = lstm_refs[3 * layer + 2][...]                    # (1,    4G) f32
        # hoisted input projection: one (T*S, 2*In) @ (2*In, 4G) matmul
        xs_rev = jnp.concatenate(
            [xs[(T - 1 - t) * S:(T - t) * S] for t in range(T)], axis=0)
        x_all = jnp.concatenate([xs, xs_rev], axis=1).astype(mm)
        gates_x = jnp.dot(x_all, wx, preferred_element_type=jnp.float32) + bg
        h_cat = jnp.zeros((S, G), jnp.float32)                # [h_fwd | h_bwd]
        c_cat = jnp.zeros((S, G), jnp.float32)
        y_f = [None] * T
        y_b = [None] * T
        for t in range(T):   # T == B == 2, static: full unroll (fori_loop if grown)
            gates = gates_x[t * S:(t + 1) * S] + jnp.dot(
                h_cat.astype(mm), wh, preferred_element_type=jnp.float32)
            sig = jax.nn.sigmoid(gates[:, :3 * G])            # [i | f | o] in one slab
            g_g = jnp.tanh(gates[:, 3 * G:4 * G])
            i_g = sig[:, 0 * G:1 * G]
            f_g = sig[:, 1 * G:2 * G]
            o_g = sig[:, 2 * G:3 * G]
            c_cat = f_g * c_cat + i_g * g_g
            h_cat = o_g * jnp.tanh(c_cat)
            y_f[t] = h_cat[:, :H]                             # fwd output at time t
            y_b[T - 1 - t] = h_cat[:, H:]                     # bwd output at T-1-t
        xs = jnp.concatenate(
            [jnp.concatenate([y_f[t], y_b[t]], axis=1) for t in range(T)], axis=0)
        # inter-layer LSTM dropout(0.1): identity (inference)

    # -- 4. head: tanh -> max over sequence axis (S) -> linear -------------------
    act = jnp.tanh(xs)                                        # (R, 2H)
    pooled = jnp.concatenate(
        [jnp.max(act[b * S:(b + 1) * S], axis=0, keepdims=True) for b in range(B)],
        axis=0)                                               # (B, 2H)
    out_ref[...] = (jnp.dot(pooled.astype(mm), wo_ref[...],
                            preferred_element_type=jnp.float32) + bo_ref[...])


def clstm_pallas(packed, tokens):
    """Single fused pallas_call for the full CLSTM forward pass."""
    B, S = tokens.shape
    wec3 = packed['conv_w']                 # (KMAX, V, FT) bf16 (embedding folded in)
    bc = packed['conv_b']                   # (1, FT) f32
    lstm = packed['lstm']                   # [(wx, wh, bg)] per LSTM layer
    wo, bo = packed['w_out'], packed['b_out']

    KMAX, V, FT = wec3.shape
    H = wo.shape[0] // 2
    C = wo.shape[1]
    L = len(lstm)
    R = B * S

    tok_col = tokens.reshape(R, 1).astype(jnp.int32)          # rows = b*S + s
    spos = jnp.tile(jnp.arange(S, dtype=jnp.int32), B).reshape(R, 1)
    wec = wec3.reshape(KMAX * V, FT)

    operands = [tok_col, spos, wec, bc]
    for wx, wh, bg in lstm:
        operands += [wx, wh, bg]
    operands += [wo, bo]

    def _full_spec(shape):
        nd = len(shape)
        return pl.BlockSpec(shape, lambda i, _nd=nd: (0,) * _nd)

    kern = functools.partial(_clstm_kernel, B=B, S=S, KMAX=KMAX, V=V, H=H, L=L)

    return pl.pallas_call(
        kern,
        out_shape=jax.ShapeDtypeStruct((B, C), jnp.float32),
        grid=(1,),
        in_specs=[_full_spec(op.shape) for op in operands],
        out_specs=pl.BlockSpec((B, C), lambda i: (0, 0)),
        compiler_params=pltpu.CompilerParams(
            dimension_semantics=("arbitrary",)),
    )(*operands)


@jax.jit
def clstm_forward(packed, tokens):
    return clstm_pallas(packed, tokens)


# ------------------------------ params & packing -------------------------------

class Args:
    CLSTM1_dim = 50          # vocab size V
    CLSTM1_embed = 32        # embedding dim E
    CLSTM1_kernel = [3, 4]   # even kernels bumped to odd (4 -> 5), like the module
    CLSTM1_filter = 8        # conv filters per kernel size
    CLSTM1_lstm_layer = 1    # LSTM layers
    num_class = 4


def init_params(key, args):
    """Raw parameters, laid out like the PyTorch module (transposed for x @ W)."""
    E = args.CLSTM1_embed
    V = args.CLSTM1_dim
    Fc = args.CLSTM1_filter
    Ks = [k + 1 if k % 2 == 0 else k for k in args.CLSTM1_kernel]
    H = Fc * len(args.CLSTM1_kernel)
    C = args.num_class
    L = args.CLSTM1_lstm_layer

    keys = iter(jax.random.split(key, 256))

    def u(shape, scale=0.1):
        return jax.random.uniform(next(keys), shape, jnp.float32, -scale, scale)

    params = {}
    params['embed'] = u((V, E), 1.0)
    # Conv2d(1, Fc, (k, E)) weight (Fc, 1, k, E) stored transposed as (k, E, Fc)
    params['convs'] = [(u((k, E, Fc)), u((Fc,))) for k in Ks]
    lstm = []
    for layer in range(L):
        In = H if layer == 0 else 2 * H
        dirs = []
        for _direction in range(2):
            wih = u((In, 4 * H))                      # weight_ih^T, gate order i|f|g|o
            whh = u((H, 4 * H))                       # weight_hh^T
            bias = (u((4 * H,)) + u((4 * H,))).reshape(1, 4 * H)   # b_ih + b_hh
            dirs.append((wih, whh, bias))
        lstm.append(tuple(dirs))
    params['lstm'] = lstm
    params['w_out'] = u((2 * H, C))                   # hidden2label weight^T
    params['b_out'] = u((C,)).reshape(1, C)
    return params


def _fuse_conv_weights(convs, E):
    """Stack all conv kernel sizes into one (kmax, E, F_total) weight.

    A kernel of (odd) size k with padding k//2 is centered inside kmax rows at
    offset (kmax - k)//2; the extra rows are zero, so one tap loop over kmax
    computes every conv at once.
    """
    kmax = max(w.shape[0] for w, _ in convs)
    blocks_w, blocks_b = [], []
    for w, b in convs:
        k, _, Fc = w.shape
        off = (kmax - k) // 2
        wpad = jnp.zeros((kmax, E, Fc), jnp.float32).at[off:off + k].set(w)
        blocks_w.append(wpad)
        blocks_b.append(b)
    wc = jnp.concatenate(blocks_w, axis=2)               # (kmax, E, F_total)
    bc = jnp.concatenate(blocks_b, axis=0).reshape(1, -1)
    return wc, bc


def _fuse_bilstm_weights(fwd, bwd, H):
    """Fuse both LSTM directions; split into input (Wx) and recurrent (Wh) parts.

    Column layout is gate-major in the order [i | f | o | g] (sigmoid gates first,
    so the kernel applies one sigmoid to the leading 3*2H columns and one tanh to
    the last 2H), and each gate block is [fwd | bwd], matching the [h_f | h_b]
    state layout.  The kernel's gate slices match this exact order.
    """
    wih_f, whh_f, b_f = fwd
    wih_b, whh_b, b_b = bwd
    In = wih_f.shape[0]
    zi = jnp.zeros((In, H), jnp.float32)
    zh = jnp.zeros((H, H), jnp.float32)
    GATE_ORDER = (0, 1, 3, 2)           # torch gate order i,f,g,o -> fused i,f,o,g
    wx_cols, wh_cols, b_cols = [], [], []
    for gi in GATE_ORDER:
        sl = slice(gi * H, (gi + 1) * H)
        wx_cols.append(jnp.concatenate([wih_f[:, sl], zi], axis=0))   # fwd col block
        wx_cols.append(jnp.concatenate([zi, wih_b[:, sl]], axis=0))   # bwd col block
        wh_cols.append(jnp.concatenate([whh_f[:, sl], zh], axis=0))
        wh_cols.append(jnp.concatenate([zh, whh_b[:, sl]], axis=0))
        b_cols += [b_f[:, sl], b_b[:, sl]]
    wx = jnp.concatenate(wx_cols, axis=1).astype(jnp.bfloat16)   # (2*In, 8*H)
    wh = jnp.concatenate(wh_cols, axis=1).astype(jnp.bfloat16)   # (2*H,  8*H)
    bg = jnp.concatenate(b_cols, axis=1)                         # (1,    8*H) f32
    return wx, wh, bg


def pack_params(params, args):
    """One-time repacking of module params into the fused-kernel layout."""
    E = args.CLSTM1_embed
    H = args.CLSTM1_filter * len(args.CLSTM1_kernel)
    wc, bc = _fuse_conv_weights(params['convs'], E)        # (KMAX, E, FT), (1, FT)
    # Fold the embedding table into the conv weights (pack time, f32, then bf16):
    #   wec[dk, v, f] = embed[v, :] @ wc[dk, :, f]
    # NOTE: for realistic vocab sizes keep this in HBM + DMA row-gather instead.
    wec = jnp.einsum('ve,kef->kvf', params['embed'], wc).astype(jnp.bfloat16)
    lstm = [_fuse_bilstm_weights(f, b, H) for (f, b) in params['lstm']]
    return {'conv_w': wec, 'conv_b': bc, 'lstm': lstm,
            'w_out': params['w_out'].astype(jnp.bfloat16),
            'b_out': params['b_out']}


# --------------------------- pure-JAX reference check ---------------------------

def _ref_lstm_direction(x, wih, whh, bias, H):
    T, N, _ = x.shape

    def step(carry, xt):
        h, c = carry
        gates = xt @ wih + h @ whh + bias
        i = jax.nn.sigmoid(gates[:, 0 * H:1 * H])
        f = jax.nn.sigmoid(gates[:, 1 * H:2 * H])
        g = jnp.tanh(gates[:, 2 * H:3 * H])
        o = jax.nn.sigmoid(gates[:, 3 * H:4 * H])
        c = f * c + i * g
        h = o * jnp.tanh(c)
        return (h, c), h

    init = (jnp.zeros((N, H), jnp.float32), jnp.zeros((N, H), jnp.float32))
    _, ys = jax.lax.scan(step, init, x)
    return ys


def reference_forward(params, tokens):
    """Pure-JAX forward matching the PyTorch module (inference semantics)."""
    emb = jnp.take(params['embed'], tokens, axis=0)            # (B, S, E)
    B, S, _ = emb.shape
    outs = []
    for w, b in params['convs']:                               # w: (k, E, Fc)
        k = w.shape[0]
        pad = k // 2
        xp = jnp.pad(emb, ((0, 0), (pad, pad), (0, 0)))
        acc = jnp.zeros((B, S, w.shape[2]), jnp.float32)
        for j in range(k):
            acc = acc + jnp.einsum('bse,ef->bsf', xp[:, j:j + S, :], w[j])
        outs.append(jax.nn.relu(acc + b))
    x = jnp.concatenate(outs, axis=-1)                         # (B, S, H)

    H = params['w_out'].shape[0] // 2
    for fwd, bwd in params['lstm']:                            # recurrence over axis 0
        y_f = _ref_lstm_direction(x, *fwd, H)
        y_b = _ref_lstm_direction(x[::-1], *bwd, H)[::-1]
        x = jnp.concatenate([y_f, y_b], axis=-1)

    pooled = jnp.max(jnp.tanh(x), axis=1)                      # (B, 2H)
    return pooled @ params['w_out'] + params['b_out']


# ------------------------------------ main --------------------------------------

if __name__ == "__main__":
    args = Args()
    key = jax.random.PRNGKey(0)
    k_tok, k_par = jax.random.split(key)

    B, S = 2, 16
    tokens = jax.random.randint(k_tok, (B, S), 0, args.CLSTM1_dim, dtype=jnp.int32)
    params = init_params(k_par, args)
    packed = pack_params(params, args)

    logits = clstm_forward(packed, tokens)
    jax.block_until_ready(logits)
    assert logits.shape == (B, args.num_class)

    ref = reference_forward(params, tokens)
    # bf16 MXU operands (f32 accumulation) => looser parity vs. the f32 reference.
    assert jnp.allclose(logits, ref, atol=2e-2, rtol=2e-2), (logits, ref)

    print("KERNEL_OK")
</pallas_src>

<mosaic_0001>
module attributes {stable_mosaic.version = 11 : i64} {
  func.func @_clstm_kernel(%arg0: i32, %arg1: memref<32x1xi32, #tpu.memory_space<vmem>>, %arg2: memref<32x1xi32, #tpu.memory_space<vmem>>, %arg3: memref<250x16xbf16, #tpu.memory_space<vmem>>, %arg4: memref<1x16xf32, #tpu.memory_space<vmem>>, %arg5: memref<32x128xbf16, #tpu.memory_space<vmem>>, %arg6: memref<32x128xbf16, #tpu.memory_space<vmem>>, %arg7: memref<1x128xf32, #tpu.memory_space<vmem>>, %arg8: memref<32x4xbf16, #tpu.memory_space<vmem>>, %arg9: memref<1x4xf32, #tpu.memory_space<vmem>>, %arg10: memref<2x4xf32, #tpu.memory_space<vmem>>) attributes {dimension_semantics = [#tpu.dimension_semantics<arbitrary>], iteration_bounds = array<i64: 1>, scalar_prefetch = 0 : i64, scratch_operands = 0 : i64, tpu.core_type = #tpu.core_type<tc>, window_params = [{pipeline_mode = #tpu.pipeline_mode<synchronous>, transform_indices = @transform_0, window_bounds = array<i64: 32, 1>}, {pipeline_mode = #tpu.pipeline_mode<synchronous>, transform_indices = @transform_1, window_bounds = array<i64: 32, 1>}, {pipeline_mode = #tpu.pipeline_mode<synchronous>, transform_indices = @transform_2, window_bounds = array<i64: 250, 16>}, {pipeline_mode = #tpu.pipeline_mode<synchronous>, transform_indices = @transform_3, window_bounds = array<i64: 1, 16>}, {pipeline_mode = #tpu.pipeline_mode<synchronous>, transform_indices = @transform_4, window_bounds = array<i64: 32, 128>}, {pipeline_mode = #tpu.pipeline_mode<synchronous>, transform_indices = @transform_5, window_bounds = array<i64: 32, 128>}, {pipeline_mode = #tpu.pipeline_mode<synchronous>, transform_indices = @transform_6, window_bounds = array<i64: 1, 128>}, {pipeline_mode = #tpu.pipeline_mode<synchronous>, transform_indices = @transform_7, window_bounds = array<i64: 32, 4>}, {pipeline_mode = #tpu.pipeline_mode<synchronous>, transform_indices = @transform_8, window_bounds = array<i64: 1, 4>}, {pipeline_mode = #tpu.pipeline_mode<synchronous>, transform_indices = @transform_9, window_bounds = array<i64: 2, 4>}]} {
    %c0 = arith.constant 0 : index
    %c0_0 = arith.constant 0 : index
    %0 = vector.load %arg1[%c0, %c0_0] : memref<32x1xi32, #tpu.memory_space<vmem>>, vector<32x1xi32>
    %c0_1 = arith.constant 0 : index
    %c0_2 = arith.constant 0 : index
    %1 = vector.load %arg2[%c0_1, %c0_2] : memref<32x1xi32, #tpu.memory_space<vmem>>, vector<32x1xi32>
    %2 = tpu.iota {dimensions = array<i32: 1>} : vector<32x250xi32>
    %c-1_i32 = arith.constant -1 : i32
    %3 = vector.broadcast %c-1_i32 : i32 to vector<2x1xi32>
    %4 = vector.extract_strided_slice %0 {offsets = [0, 0], sizes = [30, 1], strides = [1, 1]} : vector<32x1xi32> to vector<30x1xi32>
    %5 = tpu.concatenate %3, %4 in 0 : vector<2x1xi32>, vector<30x1xi32> -> vector<32x1xi32>
    %c-2_i32 = arith.constant -2 : i32
    %6 = vector.broadcast %c-2_i32 : i32 to vector<32x1xi32>
    %7 = arith.addi %1, %6 : vector<32x1xi32>
    %c0_i32 = arith.constant 0 : i32
    %8 = vector.broadcast %c0_i32 : i32 to vector<32x1xi32>
    %9 = arith.cmpi sge, %7, %8 : vector<32x1xi32>
    %c-2_i32_3 = arith.constant -2 : i32
    %10 = vector.broadcast %c-2_i32_3 : i32 to vector<32x1xi32>
    %11 = arith.addi %1, %10 : vector<32x1xi32>
    %c16_i32 = arith.constant 16 : i32
    %12 = vector.broadcast %c16_i32 : i32 to vector<32x1xi32>
    %13 = arith.cmpi slt, %11, %12 : vector<32x1xi32>
    %14 = arith.andi %9, %13 : vector<32x1xi1>
    %c0_i32_4 = arith.constant 0 : i32
    %15 = vector.broadcast %c0_i32_4 : i32 to vector<32x1xi32>
    %16 = arith.addi %5, %15 : vector<32x1xi32>
    %c-1_i32_5 = arith.constant -1 : i32
    %17 = vector.broadcast %c-1_i32_5 : i32 to vector<32x1xi32>
    %18 = arith.select %14, %16, %17 : vector<32x1xi1>, vector<32x1xi32>
    %19 = vector.broadcast %18 : vector<32x1xi32> to vector<32x250xi32>
    %20 = arith.cmpi eq, %2, %19 : vector<32x250xi32>
    %c-1_i32_6 = arith.constant -1 : i32
    %21 = vector.broadcast %c-1_i32_6 : i32 to vector<1x1xi32>
    %22 = vector.extract_strided_slice %0 {offsets = [0, 0], sizes = [31, 1], strides = [1, 1]} : vector<32x1xi32> to vector<31x1xi32>
    %23 = tpu.concatenate %21, %22 in 0 : vector<1x1xi32>, vector<31x1xi32> -> vector<32x1xi32>
    %c-1_i32_7 = arith.constant -1 : i32
    %24 = vector.broadcast %c-1_i32_7 : i32 to vector<32x1xi32>
    %25 = arith.addi %1, %24 : vector<32x1xi32>
    %c0_i32_8 = arith.constant 0 : i32
    %26 = vector.broadcast %c0_i32_8 : i32 to vector<32x1xi32>
    %27 = arith.cmpi sge, %25, %26 : vector<32x1xi32>
    %c-1_i32_9 = arith.constant -1 : i32
    %28 = vector.broadcast %c-1_i32_9 : i32 to vector<32x1xi32>
    %29 = arith.addi %1, %28 : vector<32x1xi32>
    %c16_i32_10 = arith.constant 16 : i32
    %30 = vector.broadcast %c16_i32_10 : i32 to vector<32x1xi32>
    %31 = arith.cmpi slt, %29, %30 : vector<32x1xi32>
    %32 = arith.andi %27, %31 : vector<32x1xi1>
    %c50_i32 = arith.constant 50 : i32
    %33 = vector.broadcast %c50_i32 : i32 to vector<32x1xi32>
    %34 = arith.addi %23, %33 : vector<32x1xi32>
    %c-1_i32_11 = arith.constant -1 : i32
    %35 = vector.broadcast %c-1_i32_11 : i32 to vector<32x1xi32>
    %36 = arith.select %32, %34, %35 : vector<32x1xi1>, vector<32x1xi32>
    %37 = vector.broadcast %36 : vector<32x1xi32> to vector<32x250xi32>
    %38 = arith.cmpi eq, %2, %37 : vector<32x250xi32>
    %39 = arith.ori %20, %38 : vector<32x250xi1>
    %c0_i32_12 = arith.constant 0 : i32
    %40 = vector.broadcast %c0_i32_12 : i32 to vector<32x1xi32>
    %41 = arith.addi %1, %40 : vector<32x1xi32>
    %c0_i32_13 = arith.constant 0 : i32
    %42 = vector.broadcast %c0_i32_13 : i32 to vector<32x1xi32>
    %43 = arith.cmpi sge, %41, %42 : vector<32x1xi32>
    %c0_i32_14 = arith.constant 0 : i32
    %44 = vector.broadcast %c0_i32_14 : i32 to vector<32x1xi32>
    %45 = arith.addi %1, %44 : vector<32x1xi32>
    %c16_i32_15 = arith.constant 16 : i32
    %46 = vector.broadcast %c16_i32_15 : i32 to vector<32x1xi32>
    %47 = arith.cmpi slt, %45, %46 : vector<32x1xi32>
    %48 = arith.andi %43, %47 : vector<32x1xi1>
    %c100_i32 = arith.constant 100 : i32
    %49 = vector.broadcast %c100_i32 : i32 to vector<32x1xi32>
    %50 = arith.addi %0, %49 : vector<32x1xi32>
    %c-1_i32_16 = arith.constant -1 : i32
    %51 = vector.broadcast %c-1_i32_16 : i32 to vector<32x1xi32>
    %52 = arith.select %48, %50, %51 : vector<32x1xi1>, vector<32x1xi32>
    %53 = vector.broadcast %52 : vector<32x1xi32> to vector<32x250xi32>
    %54 = arith.cmpi eq, %2, %53 : vector<32x250xi32>
    %55 = arith.ori %39, %54 : vector<32x250xi1>
    %56 = vector.extract_strided_slice %0 {offsets = [1, 0], sizes = [31, 1], strides = [1, 1]} : vector<32x1xi32> to vector<31x1xi32>
    %c-1_i32_17 = arith.constant -1 : i32
    %57 = vector.broadcast %c-1_i32_17 : i32 to vector<1x1xi32>
    %58 = tpu.concatenate %56, %57 in 0 : vector<31x1xi32>, vector<1x1xi32> -> vector<32x1xi32>
    %c1_i32 = arith.constant 1 : i32
    %59 = vector.broadcast %c1_i32 : i32 to vector<32x1xi32>
    %60 = arith.addi %1, %59 : vector<32x1xi32>
    %c0_i32_18 = arith.constant 0 : i32
    %61 = vector.broadcast %c0_i32_18 : i32 to vector<32x1xi32>
    %62 = arith.cmpi sge, %60, %61 : vector<32x1xi32>
    %c1_i32_19 = arith.constant 1 : i32
    %63 = vector.broadcast %c1_i32_19 : i32 to vector<32x1xi32>
    %64 = arith.addi %1, %63 : vector<32x1xi32>
    %c16_i32_20 = arith.constant 16 : i32
    %65 = vector.broadcast %c16_i32_20 : i32 to vector<32x1xi32>
    %66 = arith.cmpi slt, %64, %65 : vector<32x1xi32>
    %67 = arith.andi %62, %66 : vector<32x1xi1>
    %c150_i32 = arith.constant 150 : i32
    %68 = vector.broadcast %c150_i32 : i32 to vector<32x1xi32>
    %69 = arith.addi %58, %68 : vector<32x1xi32>
    %c-1_i32_21 = arith.constant -1 : i32
    %70 = vector.broadcast %c-1_i32_21 : i32 to vector<32x1xi32>
    %71 = arith.select %67, %69, %70 : vector<32x1xi1>, vector<32x1xi32>
    %72 = vector.broadcast %71 : vector<32x1xi32> to vector<32x250xi32>
    %73 = arith.cmpi eq, %2, %72 : vector<32x250xi32>
    %74 = arith.ori %55, %73 : vector<32x250xi1>
    %75 = vector.extract_strided_slice %0 {offsets = [2, 0], sizes = [30, 1], strides = [1, 1]} : vector<32x1xi32> to vector<30x1xi32>
    %c-1_i32_22 = arith.constant -1 : i32
    %76 = vector.broadcast %c-1_i32_22 : i32 to vector<2x1xi32>
    %77 = tpu.concatenate %75, %76 in 0 : vector<30x1xi32>, vector<2x1xi32> -> vector<32x1xi32>
    %c2_i32 = arith.constant 2 : i32
    %78 = vector.broadcast %c2_i32 : i32 to vector<32x1xi32>
    %79 = arith.addi %1, %78 : vector<32x1xi32>
    %c0_i32_23 = arith.constant 0 : i32
    %80 = vector.broadcast %c0_i32_23 : i32 to vector<32x1xi32>
    %81 = arith.cmpi sge, %79, %80 : vector<32x1xi32>
    %c2_i32_24 = arith.constant 2 : i32
    %82 = vector.broadcast %c2_i32_24 : i32 to vector<32x1xi32>
    %83 = arith.addi %1, %82 : vector<32x1xi32>
    %c16_i32_25 = arith.constant 16 : i32
    %84 = vector.broadcast %c16_i32_25 : i32 to vector<32x1xi32>
    %85 = arith.cmpi slt, %83, %84 : vector<32x1xi32>
    %86 = arith.andi %81, %85 : vector<32x1xi1>
    %c200_i32 = arith.constant 200 : i32
    %87 = vector.broadcast %c200_i32 : i32 to vector<32x1xi32>
    %88 = arith.addi %77, %87 : vector<32x1xi32>
    %c-1_i32_26 = arith.constant -1 : i32
    %89 = vector.broadcast %c-1_i32_26 : i32 to vector<32x1xi32>
    %90 = arith.select %86, %88, %89 : vector<32x1xi1>, vector<32x1xi32>
    %91 = vector.broadcast %90 : vector<32x1xi32> to vector<32x250xi32>
    %92 = arith.cmpi eq, %2, %91 : vector<32x250xi32>
    %93 = arith.ori %74, %92 : vector<32x250xi1>
    %94 = arith.extui %93 : vector<32x250xi1> to vector<32x250xi32>
    %95 = arith.sitofp %94 : vector<32x250xi32> to vector<32x250xf32>
    %96 = arith.truncf %95 : vector<32x250xf32> to vector<32x250xbf16>
    %c0_27 = arith.constant 0 : index
    %c0_28 = arith.constant 0 : index
    %97 = vector.load %arg3[%c0_27, %c0_28] : memref<250x16xbf16, #tpu.memory_space<vmem>>, vector<250x16xbf16>
    %cst = arith.constant dense<0.000000e+00> : vector<32x16xf32>
    %98 = tpu.matmul %96, %97, %cst {dimension_numbers = #tpu.dot_dimension_numbers<[1], [0], [0], [1], [0, 0, 1, 1], [], []>} : vector<32x250xbf16>, vector<250x16xbf16>, vector<32x16xf32> -> vector<32x16xf32>
    %c0_29 = arith.constant 0 : index
    %c0_30 = arith.constant 0 : index
    %99 = vector.load %arg4[%c0_29, %c0_30] : memref<1x16xf32, #tpu.memory_space<vmem>>, vector<1x16xf32>
    %100 = vector.broadcast %99 : vector<1x16xf32> to vector<32x16xf32>
    %101 = arith.addf %98, %100 : vector<32x16xf32>
    %cst_31 = arith.constant 0.000000e+00 : f32
    %102 = vector.broadcast %cst_31 : f32 to vector<32x16xf32>
    %103 = arith.maximumf %101, %102 : vector<32x16xf32>
    %c0_32 = arith.constant 0 : index
    %c0_33 = arith.constant 0 : index
    %104 = vector.load %arg5[%c0_32, %c0_33] : memref<32x128xbf16, #tpu.memory_space<vmem>>, vector<32x128xbf16>
    %c0_34 = arith.constant 0 : index
    %c0_35 = arith.constant 0 : index
    %105 = vector.load %arg6[%c0_34, %c0_35] : memref<32x128xbf16, #tpu.memory_space<vmem>>, vector<32x128xbf16>
    %c0_36 = arith.constant 0 : index
    %c0_37 = arith.constant 0 : index
    %106 = vector.load %arg7[%c0_36, %c0_37] : memref<1x128xf32, #tpu.memory_space<vmem>>, vector<1x128xf32>
    %107 = vector.extract_strided_slice %103 {offsets = [16, 0], sizes = [16, 16], strides = [1, 1]} : vector<32x16xf32> to vector<16x16xf32>
    %108 = vector.extract_strided_slice %103 {offsets = [0, 0], sizes = [16, 16], strides = [1, 1]} : vector<32x16xf32> to vector<16x16xf32>
    %109 = tpu.concatenate %107, %108 in 0 : vector<16x16xf32>, vector<16x16xf32> -> vector<32x16xf32>
    %110 = tpu.concatenate %103, %109 in 1 : vector<32x16xf32>, vector<32x16xf32> -> vector<32x32xf32>
    %111 = arith.truncf %110 : vector<32x32xf32> to vector<32x32xbf16>
    %cst_38 = arith.constant dense<0.000000e+00> : vector<32x128xf32>
    %112 = tpu.matmul %111, %104, %cst_38 {dimension_numbers = #tpu.dot_dimension_numbers<[1], [0], [0], [1], [0, 0, 1, 1], [], []>} : vector<32x32xbf16>, vector<32x128xbf16>, vector<32x128xf32> -> vector<32x128xf32>
    %113 = vector.broadcast %106 : vector<1x128xf32> to vector<32x128xf32>
    %114 = arith.addf %112, %113 : vector<32x128xf32>
    %cst_39 = arith.constant 0.000000e+00 : f32
    %115 = vector.broadcast %cst_39 : f32 to vector<16x32xf32>
    %cst_40 = arith.constant 0.000000e+00 : f32
    %116 = vector.broadcast %cst_40 : f32 to vector<16x32xf32>
    %117 = vector.extract_strided_slice %114 {offsets = [0, 0], sizes = [16, 128], strides = [1, 1]} : vector<32x128xf32> to vector<16x128xf32>
    %118 = arith.truncf %115 : vector<16x32xf32> to vector<16x32xbf16>
    %cst_41 = arith.constant dense<0.000000e+00> : vector<16x128xf32>
    %119 = tpu.matmul %118, %105, %cst_41 {dimension_numbers = #tpu.dot_dimension_numbers<[1], [0], [0], [1], [0, 0, 1, 1], [], []>} : vector<16x32xbf16>, vector<32x128xbf16>, vector<16x128xf32> -> vector<16x128xf32>
    %120 = arith.addf %117, %119 : vector<16x128xf32>
    %121 = vector.extract_strided_slice %120 {offsets = [0, 0], sizes = [16, 96], strides = [1, 1]} : vector<16x128xf32> to vector<16x96xf32>
    %122 = arith.negf %121 : vector<16x96xf32>
    %123 = math.exp %122 : vector<16x96xf32>
    %cst_42 = arith.constant 1.000000e+00 : f32
    %124 = vector.broadcast %cst_42 : f32 to vector<16x96xf32>
    %125 = arith.addf %124, %123 : vector<16x96xf32>
    %126 = arith.divf %124, %125 : vector<16x96xf32>
    %127 = vector.extract_strided_slice %120 {offsets = [0, 96], sizes = [16, 32], strides = [1, 1]} : vector<16x128xf32> to vector<16x32xf32>
    %128 = math.tanh %127 : vector<16x32xf32>
    %129 = vector.extract_strided_slice %126 {offsets = [0, 0], sizes = [16, 32], strides = [1, 1]} : vector<16x96xf32> to vector<16x32xf32>
    %130 = vector.extract_strided_slice %126 {offsets = [0, 32], sizes = [16, 32], strides = [1, 1]} : vector<16x96xf32> to vector<16x32xf32>
    %131 = vector.extract_strided_slice %126 {offsets = [0, 64], sizes = [16, 32], strides = [1, 1]} : vector<16x96xf32> to vector<16x32xf32>
    %132 = arith.mulf %130, %116 : vector<16x32xf32>
    %133 = arith.mulf %129, %128 : vector<16x32xf32>
    %134 = arith.addf %132, %133 : vector<16x32xf32>
    %135 = math.tanh %134 : vector<16x32xf32>
    %136 = arith.mulf %131, %135 : vector<16x32xf32>
    %137 = vector.extract_strided_slice %136 {offsets = [0, 0], sizes = [16, 16], strides = [1, 1]} : vector<16x32xf32> to vector<16x16xf32>
    %138 = vector.extract_strided_slice %136 {offsets = [0, 16], sizes = [16, 16], strides = [1, 1]} : vector<16x32xf32> to vector<16x16xf32>
    %139 = vector.extract_strided_slice %114 {offsets = [16, 0], sizes = [16, 128], strides = [1, 1]} : vector<32x128xf32> to vector<16x128xf32>
    %140 = arith.truncf %136 : vector<16x32xf32> to vector<16x32xbf16>
    %cst_43 = arith.constant dense<0.000000e+00> : vector<16x128xf32>
    %141 = tpu.matmul %140, %105, %cst_43 {dimension_numbers = #tpu.dot_dimension_numbers<[1], [0], [0], [1], [0, 0, 1, 1], [], []>} : vector<16x32xbf16>, vector<32x128xbf16>, vector<16x128xf32> -> vector<16x128xf32>
    %142 = arith.addf %139, %141 : vector<16x128xf32>
    %143 = vector.extract_strided_slice %142 {offsets = [0, 0], sizes = [16, 96], strides = [1, 1]} : vector<16x128xf32> to vector<16x96xf32>
    %144 = arith.negf %143 : vector<16x96xf32>
    %145 = math.exp %144 : vector<16x96xf32>
    %cst_44 = arith.constant 1.000000e+00 : f32
    %146 = vector.broadcast %cst_44 : f32 to vector<16x96xf32>
    %147 = arith.addf %146, %145 : vector<16x96xf32>
    %148 = arith.divf %146, %147 : vector<16x96xf32>
    %149 = vector.extract_strided_slice %142 {offsets = [0, 96], sizes = [16, 32], strides = [1, 1]} : vector<16x128xf32> to vector<16x32xf32>
    %150 = math.tanh %149 : vector<16x32xf32>
    %151 = vector.extract_strided_slice %148 {offsets = [0, 0], sizes = [16, 32], strides = [1, 1]} : vector<16x96xf32> to vector<16x32xf32>
    %152 = vector.extract_strided_slice %148 {offsets = [0, 32], sizes = [16, 32], strides = [1, 1]} : vector<16x96xf32> to vector<16x32xf32>
    %153 = vector.extract_strided_slice %148 {offsets = [0, 64], sizes = [16, 32], strides = [1, 1]} : vector<16x96xf32> to vector<16x32xf32>
    %154 = arith.mulf %152, %134 : vector<16x32xf32>
    %155 = arith.mulf %151, %150 : vector<16x32xf32>
    %156 = arith.addf %154, %155 : vector<16x32xf32>
    %157 = math.tanh %156 : vector<16x32xf32>
    %158 = arith.mulf %153, %157 : vector<16x32xf32>
    %159 = vector.extract_strided_slice %158 {offsets = [0, 0], sizes = [16, 16], strides = [1, 1]} : vector<16x32xf32> to vector<16x16xf32>
    %160 = vector.extract_strided_slice %158 {offsets = [0, 16], sizes = [16, 16], strides = [1, 1]} : vector<16x32xf32> to vector<16x16xf32>
    %161 = tpu.concatenate %137, %160 in 1 : vector<16x16xf32>, vector<16x16xf32> -> vector<16x32xf32>
    %162 = tpu.concatenate %159, %138 in 1 : vector<16x16xf32>, vector<16x16xf32> -> vector<16x32xf32>
    %163 = tpu.concatenate %161, %162 in 0 : vector<16x32xf32>, vector<16x32xf32> -> vector<32x32xf32>
    %164 = math.tanh %163 : vector<32x32xf32>
    %165 = vector.extract_strided_slice %164 {offsets = [0, 0], sizes = [16, 32], strides = [1, 1]} : vector<32x32xf32> to vector<16x32xf32>
    %cst_45 = arith.constant dense<0xFF800000> : vector<32xf32>
    %166 = vector.multi_reduction <maximumf>, %165, %cst_45 [0] : vector<16x32xf32> to vector<32xf32>
    %167 = vector.shape_cast %166 : vector<32xf32> to vector<1x32xf32>
    %168 = vector.extract_strided_slice %164 {offsets = [16, 0], sizes = [16, 32], strides = [1, 1]} : vector<32x32xf32> to vector<16x32xf32>
    %cst_46 = arith.constant dense<0xFF800000> : vector<32xf32>
    %169 = vector.multi_reduction <maximumf>, %168, %cst_46 [0] : vector<16x32xf32> to vector<32xf32>
    %170 = vector.shape_cast %169 : vector<32xf32> to vector<1x32xf32>
    %171 = tpu.concatenate %167, %170 in 0 : vector<1x32xf32>, vector<1x32xf32> -> vector<2x32xf32>
    %172 = arith.truncf %171 : vector<2x32xf32> to vector<2x32xbf16>
    %c0_47 = arith.constant 0 : index
    %c0_48 = arith.constant 0 : index
    %173 = vector.load %arg8[%c0_47, %c0_48] : memref<32x4xbf16, #tpu.memory_space<vmem>>, vector<32x4xbf16>
    %cst_49 = arith.constant dense<0.000000e+00> : vector<2x4xf32>
    %174 = tpu.matmul %172, %173, %cst_49 {dimension_numbers = #tpu.dot_dimension_numbers<[1], [0], [0], [1], [0, 0, 1, 1], [], []>} : vector<2x32xbf16>, vector<32x4xbf16>, vector<2x4xf32> -> vector<2x4xf32>
    %c0_50 = arith.constant 0 : index
    %c0_51 = arith.constant 0 : index
    %175 = vector.load %arg9[%c0_50, %c0_51] : memref<1x4xf32, #tpu.memory_space<vmem>>, vector<1x4xf32>
    %176 = vector.broadcast %175 : vector<1x4xf32> to vector<2x4xf32>
    %177 = arith.addf %174, %176 : vector<2x4xf32>
    %c0_52 = arith.constant 0 : index
    %c0_53 = arith.constant 0 : index
    %178 = vector.load %arg10[%c0_52, %c0_53] : memref<2x4xf32, #tpu.memory_space<vmem>>, vector<2x4xf32>
    tpu.vector_store %arg10[%c0_52, %c0_53], %177 {strides = array<i32>} : memref<2x4xf32, #tpu.memory_space<vmem>>, vector<2x4xf32>,
    return
  }
  func.func @transform_0(%arg0: i32) -> (i32, i32) {
    %c0_i32 = arith.constant 0 : i32
    %c0_i32_0 = arith.constant 0 : i32
    %c0_i32_1 = arith.constant 0 : i32
    return %c0_i32, %c0_i32_0 : i32, i32
  }
  func.func @transform_1(%arg0: i32) -> (i32, i32) {
    %c0_i32 = arith.constant 0 : i32
    %c0_i32_0 = arith.constant 0 : i32
    %c0_i32_1 = arith.constant 0 : i32
    return %c0_i32, %c0_i32_0 : i32, i32
  }
  func.func @transform_2(%arg0: i32) -> (i32, i32) {
    %c0_i32 = arith.constant 0 : i32
    %c0_i32_0 = arith.constant 0 : i32
    %c0_i32_1 = arith.constant 0 : i32
    return %c0_i32, %c0_i32_0 : i32, i32
  }
  func.func @transform_3(%arg0: i32) -> (i32, i32) {
    %c0_i32 = arith.constant 0 : i32
    %c0_i32_0 = arith.constant 0 : i32
    %c0_i32_1 = arith.constant 0 : i32
    return %c0_i32, %c0_i32_0 : i32, i32
  }
  func.func @transform_4(%arg0: i32) -> (i32, i32) {
    %c0_i32 = arith.constant 0 : i32
    %c0_i32_0 = arith.constant 0 : i32
    %c0_i32_1 = arith.constant 0 : i32
    return %c0_i32, %c0_i32_0 : i32, i32
  }
  func.func @transform_5(%arg0: i32) -> (i32, i32) {
    %c0_i32 = arith.constant 0 : i32
    %c0_i32_0 = arith.constant 0 : i32
    %c0_i32_1 = arith.constant 0 : i32
    return %c0_i32, %c0_i32_0 : i32, i32
  }
  func.func @transform_6(%arg0: i32) -> (i32, i32) {
    %c0_i32 = arith.constant 0 : i32
    %c0_i32_0 = arith.constant 0 : i32
    %c0_i32_1 = arith.constant 0 : i32
    return %c0_i32, %c0_i32_0 : i32, i32
  }
  func.func @transform_7(%arg0: i32) -> (i32, i32) {
    %c0_i32 = arith.constant 0 : i32
    %c0_i32_0 = arith.constant 0 : i32
    %c0_i32_1 = arith.constant 0 : i32
    return %c0_i32, %c0_i32_0 : i32, i32
  }
  func.func @transform_8(%arg0: i32) -> (i32, i32) {
    %c0_i32 = arith.constant 0 : i32
    %c0_i32_0 = arith.constant 0 : i32
    %c0_i32_1 = arith.constant 0 : i32
    return %c0_i32, %c0_i32_0 : i32, i32
  }
  func.func @transform_9(%arg0: i32) -> (i32, i32) {
    %c0_i32 = arith.constant 0 : i32
    %c0_i32_0 = arith.constant 0 : i32
    %c0_i32_1 = arith.constant 0 : i32
    return %c0_i32, %c0_i32_0 : i32, i32
  }
}

</mosaic_0001>

<bundles_post_ra>
// kernel: tile.0
= control target key start
LH: loop header
LB: loop body
LE: loop exit
PB: predicated region body
PF: predicated region fallthrough
CT: control target
= control target key end

     0   :  { %s131_s8 = smov 125   ;;  %s132_s9 = smov 126   ;;  %vm8_vm0 = vcmask 7168   ;;  %s222_s0 = inlined_call_operand.vmem [shape: s32[2,16], index: 0, kind: input, shape index: {}]   ;;  %s223_s1 = inlined_call_operand.vmem [shape: s32[32,1], index: 1, kind: output, shape index: {}]  }
   0x1   :  { %v5_v0 = vld [vmem:[%s222_s0] sm:$0x3]  ;;  %s130_s0 = smov 127   ;;  %s133_s10 = smov 124  }
   0x2   :  { %6 = vst [vmem:[#allocation0] sm:$0x3] %v5_v0  ;;  %s134_s11 = smov 123   ;;  %s135_s12 = smov 122  }
   0x3   :  { %s136_s13 = smov 121   ;;  %s137_s14 = smov 120  }
   0x4   :  { %s138_s17 = smov 119   ;;  %s139_s18 = smov 118  }
   0x5   :  { %s140_s19 = smov 117   ;;  %s141_s20 = smov 116  }
   0x6   :  { %s142_s21 = smov 115   ;;  %s143_s22 = smov 114  }
   0x7   :  { %s144_s23 = smov 113  }
   0x9   :  { %v10_v1 = vld [vmem:[#allocation0] sm:$0x3]  }
   0xa   :  { %v22_v2 = vld [vmem:[#allocation0] sm:$0x3]   ;;  %11 = vrot.lane.b32.xlu0 %v10_v1, %s130_s0 }
   0xb   :  { %23 = vrot.lane.b32.xlu1 %v22_v2, %s131_s8  ;;  %v16_v3 = vld [vmem:[#allocation0] sm:$0x3]  }
   0xc   :  { %v28_v4 = vld [vmem:[#allocation0] sm:$0x3]  }
   0xd   :  { %v34_v5 = vld [vmem:[#allocation0] sm:$0x3]  }
   0xe   :  { %17 = vrot.lane.b32.xlu0 %v16_v3, %s132_s9  ;;  %v40_v6 = vld [vmem:[#allocation0] sm:$0x3]  }
   0xf   :  { %29 = vrot.lane.b32.xlu1 %v28_v4, %s133_s10  ;;  %v46_v7 = vld [vmem:[#allocation0] sm:$0x3]  }
  0x10   :  { %v52_v8 = vld [vmem:[#allocation0] sm:$0x3]  }
  0x11   :  { %v58_v9 = vld [vmem:[#allocation0] sm:$0x3]  }
  0x12   :  { %35 = vrot.lane.b32.xlu0 %v34_v5, %s134_s11  ;;  %v64_v10 = vld [vmem:[#allocation0] sm:$0x3]  }
  0x13   :  { %41 = vrot.lane.b32.xlu1 %v40_v6, %s135_s12  ;;  %v7_v11 = vld [vmem:[#allocation0] sm:$0x3]  }
  0x14   :  { %9 = vst.msk [vmem:[%s223_s1] ss:$16 sm:$0x3] %vm8_vm0, %v7_v11   ;;  %v70_v12 = vld [vmem:[#allocation0] sm:$0x3]  }
  0x15   :  { %v76_v13 = vld [vmem:[#allocation0] sm:$0x3]  }
  0x16   :  { %47 = vrot.lane.b32.xlu0 %v46_v7, %s136_s13  ;;  %v82_v14 = vld [vmem:[#allocation0] sm:$0x3]  }
  0x17   :  { %53 = vrot.lane.b32.xlu1 %v52_v8, %s137_s14  ;;  %v88_v15 = vld [vmem:[#allocation0] sm:$0x3]  }
  0x18   :  { %v94_v16 = vld [vmem:[#allocation0] sm:$0x3]  }
  0x1a   :  { %59 = vrot.lane.b32.xlu0 %v58_v9, %s138_s17 }
  0x1b   :  { %65 = vrot.lane.b32.xlu1 %v64_v10, %s139_s18 }
  0x1e   :  { %71 = vrot.lane.b32.xlu0 %v70_v12, %s140_s19 }
  0x1f   :  { %77 = vrot.lane.b32.xlu1 %v76_v13, %s141_s20 }
  0x22   :  { %83 = vrot.lane.b32.xlu0 %v82_v14, %s142_s21 }
  0x23   :  { %89 = vrot.lane.b32.xlu1 %v88_v15, %s143_s22 }
  0x26   :  { %95 = vrot.lane.b32.xlu0 %v94_v16, %s144_s23 }
  0x7c   :  { %v12_v17 = vpop.permute.xlu0 %11  }
  0x7d   :  { %v24_v18 = vpop.permute.xlu1 %23   ;;  %100 = vst.msk [vmem:[%s223_s1 + $0x1] ss:$16 sm:$0x3] %vm8_vm0, %v12_v17  }
  0x7e   :  { %102 = vst.msk [vmem:[%s223_s1 + $0x3] ss:$16 sm:$0x3] %vm8_vm0, %v24_v18  }
  0x80   :  { %v18_v19 = vpop.permute.xlu0 %17  }
  0x81   :  { %v30_v20 = vpop.permute.xlu1 %29   ;;  %101 = vst.msk [vmem:[%s223_s1 + $0x2] ss:$16 sm:$0x3] %vm8_vm0, %v18_v19  }
  0x82   :  { %103 = vst.msk [vmem:[%s223_s1 + $0x4] ss:$16 sm:$0x3] %vm8_vm0, %v30_v20  }
  0x84   :  { %v36_v21 = vpop.permute.xlu0 %35  }
  0x85   :  { %v42_v22 = vpop.permute.xlu1 %41   ;;  %104 = vst.msk [vmem:[%s223_s1 + $0x5] ss:$16 sm:$0x3] %vm8_vm0, %v36_v21  }
  0x86   :  { %105 = vst.msk [vmem:[%s223_s1 + $0x6] ss:$16 sm:$0x3] %vm8_vm0, %v42_v22  }
  0x88   :  { %v48_v23 = vpop.permute.xlu0 %47  }
  0x89   :  { %v54_v24 = vpop.permute.xlu1 %53   ;;  %106 = vst.msk [vmem:[%s223_s1 + $0x7] ss:$16 sm:$0x3] %vm8_vm0, %v48_v23  }
  0x8a   :  { %107 = vst.msk [vmem:[%s223_s1 + $0x8] ss:$16 sm:$0x3] %vm8_vm0, %v54_v24  }
  0x8c   :  { %v60_v25 = vpop.permute.xlu0 %59  }
  0x8d   :  { %v66_v26 = vpop.permute.xlu1 %65   ;;  %108 = vst.msk [vmem:[%s223_s1 + $0x9] ss:$16 sm:$0x3] %vm8_vm0, %v60_v25  }
  0x8e   :  { %109 = vst.msk [vmem:[%s223_s1 + $0xa] ss:$16 sm:$0x3] %vm8_vm0, %v66_v26  }
  0x90   :  { %v72_v27 = vpop.permute.xlu0 %71  }
  0x91   :  { %v78_v28 = vpop.permute.xlu1 %77   ;;  %110 = vst.msk [vmem:[%s223_s1 + $0xb] ss:$16 sm:$0x3] %vm8_vm0, %v72_v27  }
  0x92   :  { %111 = vst.msk [vmem:[%s223_s1 + $0xc] ss:$16 sm:$0x3] %vm8_vm0, %v78_v28  }
  0x94   :  { %v84_v29 = vpop.permute.xlu0 %83  }
  0x95   :  { %v90_v30 = vpop.permute.xlu1 %89   ;;  %112 = vst.msk [vmem:[%s223_s1 + $0xd] ss:$16 sm:$0x3] %vm8_vm0, %v84_v29  }
  0x96   :  { %113 = vst.msk [vmem:[%s223_s1 + $0xe] ss:$16 sm:$0x3] %vm8_vm0, %v90_v30  }
  0x98   :  { %v96_v31 = vpop.permute.xlu0 %95  }
  0x99   :  { %114 = vst.msk [vmem:[%s223_s1 + $0xf] ss:$16 sm:$0x3] %vm8_vm0, %v96_v31  }

// kernel: clstm_forward.1
= control target key start
LH: loop header
LB: loop body
LE: loop exit
PB: predicated region body
PF: predicated region fallthrough
CT: control target
= control target key end

     0   :  { %vm45_vm0 = vcmask 1041408   ;;  %vm1676_vm1 = vcmask 1040384   ;;  %v1199_v3 = vmov 0   ;;  %s1666_s0 = inlined_call_operand.vmem [shape: s32[32,1], index: 0, kind: input, shape index: {}]   ;;  %s1667_s1 = inlined_call_operand.vmem [shape: s32[32,1], index: 1, kind: input, shape index: {}]   ;;  %s1668_s2 = inlined_call_operand.vmem [shape: bf16[250,16], index: 2, kind: input, shape index: {}]   ;;  %s1669_s3 = inlined_call_operand.vmem [shape: f32[1,16], index: 3, kind: input, shape index: {}]   ;;  %s1670_s4 = inlined_call_operand.vmem [shape: bf16[32,128], index: 4, kind: input, shape index: {}]   ;;  %s1671_s5 = inlined_call_operand.vmem [shape: bf16[32,128], index: 5, kind: input, shape index: {}]   ;;  %s1672_s6 = inlined_call_operand.vmem [shape: f32[1,128], index: 6, kind: input, shape index: {}]   ;;  %s1673_s7 = inlined_call_operand.vmem [shape: bf16[32,4], index: 7, kind: input, shape index: {}]   ;;  %s1674_s8 = inlined_call_operand.vmem [shape: f32[1,4], index: 8, kind: input, shape index: {}]   ;;  %s1675_s9 = inlined_call_operand.hbm [shape: f32[2,4], index: 9, kind: output, shape index: {}]  }
   0x1   :  { %v1259_v0 = vld [vmem:[%s1666_s0] sm:$0xff]  ;;  %v1269_v2 = vld [vmem:[%s1666_s0 + $0x8] sm:$0xff]  ;;  %1103 = vset.pattern.permute.xlu0 %v1199_v3  ;;  %1104 = vset.pattern.permute.xlu1 %v1199_v3  ;;  %v1301_v22 = vld [vmem:[%s1666_s0 + $0x10] sm:$0xff] }
   0x2   :  { %v1264_v1 = vld [vmem:[%s1667_s1] sm:$0xff]  ;;  %v46_v4 = vrot.slane %v1259_v0, 6  ;;  %v95_v6 = vrot.slane %v1259_v0, 7  ;;  %v1280_v8 = vld [vmem:[%s1667_s1 + $0x8] sm:$0xff]  ;;  %v47_v9 = vrot.slane %v1269_v2, 6  ;;  %v96_v11 = vrot.slane %v1269_v2, 7 }
   0x3   :  { %v54_v5 = vadd.s32 4294967294, %v1264_v1  ;;  %v103_v7 = vadd.s32 4294967295, %v1264_v1  ;;  %v55_v10 = vadd.s32 4294967294, %v1280_v8  ;;  %v104_v12 = vadd.s32 4294967295, %v1280_v8  ;;  %v1343_v42 = vld [vmem:[%s1667_s1 + $0x10] sm:$0xff]  ;;  %v1353_v46 = vld [vmem:[%s1666_s0 + $0x18] sm:$0xff] }
   0x4   :  { %v53_v13 = vsel %vm45_vm0, 4294967295, %v46_v4  ;;  %v102_v14 = vsel %vm1676_vm1, 4294967295, %v95_v6  ;;  %v48_v16 = vsel %vm45_vm0, %v46_v4, %v47_v9  ;;  %v97_v18 = vsel %vm1676_vm1, %v95_v6, %v96_v11  ;;  %v1374_v57 = vld [vmem:[%s1667_s1 + $0x18] sm:$0xff] }
   0x5   :  { %vm58_vm2 = vcmp.ge.s32.totalorder %v54_v5, 0  ;;  %vm62_vm3 = vcmp.lt.s32.totalorder %v54_v5, 16  ;;  %vm107_vm5 = vcmp.ge.s32.totalorder %v103_v7, 0  ;;  %vm111_vm6 = vcmp.lt.s32.totalorder %v103_v7, 16  ;;  %v1115_v24 = vld [vmem:[%s1668_s2 + $0x78] sm:$0x1f]  }
   0x6   :  { %vm66_vm4 = vmand %vm58_vm2, %vm62_vm3  ;;  %v119_v15 = vadd.s32 50, %v102_v14  ;;  %vm59_vm8 = vcmp.ge.s32.totalorder %v55_v10, 0  ;;  %vm63_vm9 = vcmp.lt.s32.totalorder %v55_v10, 16  ;;  %vm108_vm11 = vcmp.ge.s32.totalorder %v104_v12, 0  ;;  %v1116_v30 = vld [vmem:[%s1668_s2 + $0x38] sm:$0xff]  }
   0x7   :  { %v70_v17 = vsel %vm66_vm4, %v53_v13, 4294967295  ;;  %vm115_vm7 = vmand %vm107_vm5, %vm111_vm6  ;;  %vm112_vm12 = vcmp.lt.s32.totalorder %v104_v12, 16  ;;  %v120_v21 = vadd.s32 50, %v97_v18  ;;  %vm155_vm14 = vcmp.ge.s32.totalorder %v1264_v1, 0 }
   0x8   :  { %75 = vperm.xlu0 %1103, %v70_v17   ;;  %v123_v19 = vsel %vm115_vm7, %v119_v15, 4294967295  ;;  %vm1294_vm10 = vmand %vm59_vm8, %vm63_vm9  ;;  %vm159_vm15 = vcmp.lt.s32.totalorder %v1264_v1, 16  ;;  %v167_v25 = vadd.s32 100, %v1259_v0  ;;  %vm156_vm3 = vcmp.ge.s32.totalorder %v1280_v8, 0 }
   0x9   :  { %128 = vperm.xlu1 %1104, %v123_v19   ;;  %v71_v23 = vsel %vm1294_vm10, %v48_v16, 4294967295  ;;  %vm1305_vm13 = vmand %vm108_vm11, %vm112_vm12  ;;  %vm160_vm4 = vcmp.lt.s32.totalorder %v1280_v8, 16  ;;  %v168_v28 = vadd.s32 100, %v1269_v2  ;;  %vm203_vm6 = vcmask 1046528  }
   0xa   :  { %v124_v26 = vsel %vm1305_vm13, %v120_v21, 4294967295  ;;  %vm1314_vm2 = vmand %vm155_vm14, %vm159_vm15  ;;  %v204_v31 = vrot.slane %v1259_v0, 1  ;;  %v205_v32 = vrot.slane %v1269_v2, 1  ;;  %v212_v34 = vadd.s32 1, %v1264_v1 }
   0xb   :  { %v171_v29 = vsel %vm1314_vm2, %v167_v25, 4294967295  ;;  %vm1323_vm5 = vmand %vm156_vm3, %vm160_vm4  ;;  %v207_v35 = vrot.slane %v1301_v22, 1  ;;  %v213_v36 = vadd.s32 1, %v1280_v8  ;;  %vm264_vm7 = vcmask 1045504  }
   0xc   :  { %78 = vperm.xlu0 %1103, %v71_v23   ;;  %v172_v33 = vsel %vm1323_vm5, %v168_v28, 4294967295  ;;  %v206_v37 = vsel %vm203_vm6, %v204_v31, %v205_v32  ;;  %v265_v38 = vrot.slane %v1259_v0, 2  ;;  %v266_v39 = vrot.slane %v1269_v2, 2 }
   0xd   :  { %131 = vperm.xlu1 %1104, %v124_v26   ;;  %vm216_vm8 = vcmp.ge.s32.totalorder %v212_v34, 0  ;;  %vm220_vm9 = vcmp.lt.s32.totalorder %v212_v34, 16  ;;  %v228_v40 = vadd.s32 150, %v206_v37  ;;  %v208_v41 = vsel %vm203_vm6, %v205_v32, %v207_v35  ;;  %v1117_v34 = vld [vmem:[%s1668_s2 + $0x70] sm:$0xff]  }
   0xe   :  { %vm1345_vm10 = vmand %vm216_vm8, %vm220_vm9  ;;  %vm217_vm11 = vcmp.ge.s32.totalorder %v213_v36, 0  ;;  %vm221_vm12 = vcmp.lt.s32.totalorder %v213_v36, 16  ;;  %v229_v44 = vadd.s32 150, %v208_v41  ;;  %v267_v45 = vsel %vm264_vm7, %v265_v38, %v266_v39  ;;  %v1118_v41 = vld [vmem:[%s1668_s2 + $0x30] sm:$0xff]  }
   0xf   :  { %v232_v47 = vsel %vm1345_vm10, %v228_v40, 4294967295  ;;  %vm1357_vm13 = vmand %vm217_vm11, %vm221_vm12  ;;  %v273_v49 = vadd.s32 2, %v1264_v1  ;;  %v289_v50 = vadd.s32 200, %v267_v45  ;;  %v268_v51 = vrot.slane %v1301_v22, 2 }
  0x10   :  { %176 = vperm.xlu0 %1103, %v171_v29   ;;  %v233_v52 = vsel %vm1357_vm13, %v229_v44, 4294967295  ;;  %v274_v53 = vadd.s32 2, %v1280_v8  ;;  %v49_v54 = vrot.slane %v1301_v22, 6  ;;  %v56_v55 = vadd.s32 4294967294, %v1343_v42  ;;  %v1119_v44 = vld [vmem:[%s1668_s2 + $0x68] sm:$0xff]  }
  0x11   :  { %179 = vperm.xlu1 %1104, %v172_v33   ;;  %vm277_vm14 = vcmp.ge.s32.totalorder %v273_v49, 0  ;;  %vm281_vm15 = vcmp.lt.s32.totalorder %v273_v49, 16  ;;  %v269_v56 = vsel %vm264_vm7, %v266_v39, %v268_v51  ;;  %v51_v58 = vrot.slane %v1353_v46, 6 }
  0x12   :  { %vm1377_vm2 = vmand %vm277_vm14, %vm281_vm15  ;;  %vm278_vm3 = vcmp.ge.s32.totalorder %v274_v53, 0  ;;  %vm282_vm4 = vcmp.lt.s32.totalorder %v274_v53, 16  ;;  %v290_v60 = vadd.s32 200, %v269_v56  ;;  %v50_v62 = vsel %vm45_vm0, %v47_v9, %v49_v54 }
  0x13   :  { %vm1381_vm5 = vmand %vm278_vm3, %vm282_vm4  ;;  %vm60_vm8 = vcmp.ge.s32.totalorder %v56_v55, 0  ;;  %vm64_vm9 = vcmp.lt.s32.totalorder %v56_v55, 16  ;;  %v293_v63 = vsel %vm1377_vm2, %v289_v50, 4294967295  ;;  %v57_v0 = vadd.s32 4294967294, %v1374_v57 }
  0x14   :  { %237 = vperm.xlu0 %1103, %v232_v47   ;;  %v98_v1 = vrot.slane %v1301_v22, 7  ;;  %v105_v4 = vadd.s32 4294967295, %v1343_v42  ;;  %v294_v5 = vsel %vm1381_vm5, %v290_v60, 4294967295  ;;  %vm1395_vm10 = vmand %vm60_vm8, %vm64_vm9  ;;  %v52_v7 = vsel %vm45_vm0, %v49_v54, %v51_v58 }
  0x15   :  { %240 = vperm.xlu1 %1104, %v233_v52   ;;  %v100_v8 = vrot.slane %v1353_v46, 7  ;;  %v106_v9 = vadd.s32 4294967295, %v1374_v57  ;;  %vm61_vm11 = vcmp.ge.s32.totalorder %v57_v0, 0  ;;  %vm65_vm12 = vcmp.lt.s32.totalorder %v57_v0, 16  ;;  %v1121_v52 = vld [vmem:[%s1668_s2 + $0x60] sm:$0xff]  }
  0x16   :  { %v99_v10 = vsel %vm1676_vm1, %v96_v11, %v98_v1  ;;  %vm109_vm13 = vcmp.ge.s32.totalorder %v105_v4, 0  ;;  %vm1405_vm14 = vmand %vm61_vm11, %vm65_vm12  ;;  %vm113_vm15 = vcmp.lt.s32.totalorder %v105_v4, 16  ;;  %v72_v15 = vsel %vm1395_vm10, %v50_v62, 4294967295 }
  0x17   :  { %v121_v13 = vadd.s32 50, %v99_v10  ;;  %v101_v14 = vsel %vm1676_vm1, %v98_v1, %v100_v8  ;;  %vm110_vm0 = vcmp.ge.s32.totalorder %v106_v9, 0  ;;  %vm1412_vm2 = vmand %vm109_vm13, %vm113_vm15  ;;  %vm114_vm3 = vcmp.lt.s32.totalorder %v106_v9, 16 }
  0x18   :  { %298 = vperm.xlu0 %1103, %v293_v63   ;;  %v122_v2 = vadd.s32 50, %v101_v14  ;;  %v73_v11 = vsel %vm1405_vm14, %v52_v7, 4294967295  ;;  %vm1418_vm4 = vmand %vm110_vm0, %vm114_vm3  ;;  %vm157_vm5 = vcmp.ge.s32.totalorder %v1343_v42, 0  ;;  %vm161_vm8 = vcmp.lt.s32.totalorder %v1343_v42, 16 }
  0x19   :  { %301 = vperm.xlu1 %1104, %v294_v5   ;;  %v125_v18 = vsel %vm1412_vm2, %v121_v13, 4294967295  ;;  %v209_v19 = vrot.slane %v1353_v46, 1  ;;  %v214_v20 = vadd.s32 1, %v1343_v42  ;;  %v169_v21 = vadd.s32 100, %v1301_v22  ;;  %vm1437_vm11 = vmand %vm157_vm5, %vm161_vm8 }
  0x1a   :  { %vm158_vm9 = vcmp.ge.s32.totalorder %v1374_v57, 0  ;;  %vm162_vm10 = vcmp.lt.s32.totalorder %v1374_v57, 16  ;;  %v215_v23 = vadd.s32 1, %v1374_v57  ;;  %v126_v25 = vsel %vm1418_vm4, %v122_v2, 4294967295 }
  0x1b   :  { %v210_v27 = vsel %vm203_vm6, %v207_v35, %v209_v19  ;;  %v270_v28 = vrot.slane %v1353_v46, 2  ;;  %v275_v29 = vadd.s32 2, %v1343_v42  ;;  %v170_v31 = vadd.s32 100, %v1353_v46  ;;  %vm1453_vm14 = vmand %vm158_vm9, %vm162_vm10 }
  0x1c   :  { %81 = vperm.xlu0 %1103, %v72_v15   ;;  %vm218_vm12 = vcmp.ge.s32.totalorder %v214_v20, 0  ;;  %vm222_vm13 = vcmp.lt.s32.totalorder %v214_v20, 16  ;;  %v211_v32 = vsel %vm203_vm6, %v209_v19, 4294967295  ;;  %vm219_vm15 = vcmp.ge.s32.totalorder %v215_v23, 0 }
  0x1d   :  { %84 = vperm.xlu1 %1104, %v73_v11   ;;  %vm223_vm0 = vcmp.lt.s32.totalorder %v215_v23, 16  ;;  %v173_v35 = vsel %vm1437_vm11, %v169_v21, 4294967295  ;;  %v230_v36 = vadd.s32 150, %v210_v27  ;;  %v231_v37 = vadd.s32 150, %v211_v32  ;;  %vm1463_vm6 = vmand %vm218_vm12, %vm222_vm13 }
  0x1e   :  { %v276_v38 = vadd.s32 2, %v1374_v57  ;;  %v271_v40 = vsel %vm264_vm7, %v268_v51, %v270_v28  ;;  %vm279_vm2 = vcmp.ge.s32.totalorder %v275_v29, 0  ;;  %vm283_vm3 = vcmp.lt.s32.totalorder %v275_v29, 16  ;;  %vm1477_vm5 = vmand %vm219_vm15, %vm223_vm0  ;;  %v1120_v51 = vld [vmem:[%s1668_s2 + $0x28] sm:$0xff]  }
  0x1f   :  { %vm486_vm4 = vcmask 1044480   ;;  %v174_v42 = vsel %vm1453_vm14, %v170_v31, 4294967295  ;;  %v272_v22 = vsel %vm264_vm7, %v270_v28, 4294967295  ;;  %v234_v45 = vsel %vm1463_vm6, %v230_v36, 4294967295  ;;  %vm1487_vm10 = vmand %vm279_vm2, %vm283_vm3 }
  0x20   :  { %134 = vperm.xlu0 %1103, %v125_v18   ;;  %vm280_vm8 = vcmp.ge.s32.totalorder %v276_v38, 0  ;;  %vm284_vm9 = vcmp.lt.s32.totalorder %v276_v38, 16  ;;  %1095 = vmatprep.subr.msk.bf16.mxu0 %vm486_vm4, %v1115_v24  ;;  %v291_v47 = vadd.s32 200, %v271_v40  ;;  %v235_v48 = vsel %vm1477_vm5, %v231_v37, 4294967295 }
  0x21   :  { %137 = vperm.xlu1 %1104, %v126_v25   ;;  %1023 = vmatpush3.bf16.msra.mxu0 %v1116_v30  ;;  %vm1493_vm7 = vmand %vm280_vm8, %vm284_vm9  ;;  %v292_v50 = vadd.s32 200, %v272_v22 }
  0x22   :  { %1024 = vmatprep.subr.bf16.mxu0 %v1117_v34  ;;  %v295_v53 = vsel %vm1487_vm10, %v291_v47, 4294967295 }
  0x24   :  { %182 = vperm.xlu0 %1103, %v173_v35  }
  0x25   :  { %185 = vperm.xlu1 %1104, %v174_v42   ;;  %1025 = vmatpush3.bf16.msra.mxu0 %v1118_v41 }
  0x26   :  { %1026 = vmatprep.subr.bf16.mxu0 %v1119_v44 }
  0x28   :  { %243 = vperm.xlu0 %1103, %v234_v45  }
  0x29   :  { %246 = vperm.xlu1 %1104, %v235_v48  }
  0x2a   :  { %14 = vsyncpa [#allocation3], 0  ;;  %v296_v54 = vsel %vm1493_vm7, %v292_v50, 4294967295  ;;  %1027 = vmatpush3.bf16.msra.mxu0 %v1120_v51  ;;  %v1122_v55 = vld [vmem:[%s1668_s2 + $0x20] sm:$0xff]   ;;  %v1123_v56 = vld [vmem:[%s1668_s2 + $0x58] sm:$0xff]   ;;  %v42_v0 = vlaneseq  ;;  %v1200_v16 = vmov 0.0  }
  0x2b   :  { %1028 = vmatprep.subr.bf16.mxu0 %v1121_v52  ;;  %v1124_v57 = vld [vmem:[%s1668_s2 + $0x18] sm:$0xff]   ;;  %v1125_v58 = vld [vmem:[%s1668_s2 + $0x50] sm:$0xff]   ;;  %v1127_v60 = vld [vmem:[%s1668_s2 + $0x48] sm:$0xff]   ;;  %s1201_s14 = smov 16   ;;  %s1203_s20 = smov 32  }
  0x2c   :  { %304 = vperm.xlu0 %1103, %v295_v53   ;;  %v1126_v59 = vld [vmem:[%s1668_s2 + $0x10] sm:$0xff]   ;;  %v1128_v61 = vld [vmem:[%s1668_s2 + $0x8] sm:$0xff]   ;;  %v1129_v62 = vld [vmem:[%s1668_s2 + $0x40] sm:$0xff]   ;;  %v1534_v1 = vand.u32 127, %v42_v0  ;;  %s1205_s24 = smov [#allocation2]  }
  0x2d   :  { %307 = vperm.xlu1 %1104, %v296_v54   ;;  %v1130_v63 = vld [vmem:[%s1668_s2] sm:$0xff]   ;;  %v1131_v43 = vld [vmem:[%s1670_s4 + $0x8] sm:$0xff]   ;;  %s971_s25 = sshll.u32 %s1205_s24, 4  ;;  %s972_s25 = int_to_ptr.vmem [resolvable:$true] %s971_s25 }
  0x2e   :  { %1029 = vmatpush3.bf16.msra.mxu0 %v1122_v55  ;;  %v1537_v4 = vadd.s32 128, %v1534_v1  ;;  %v987_v41 = vld [vmem:[%s1669_s3] ss:$0 sm:$0xff]  ;;  %1063 = vmatprep.subr.bf16.mxu1 %v1131_v43  ;;  %s1177_s26 = scalar_lea.vmem %s972_s25, 32  ;;  %p1182_p1 = scmp.lt.s32.totalorder %s972_s25, %s972_s25 }
  0x2f   :  { %1030 = vmatprep.subr.bf16.mxu0 %v1123_v56  ;;  %1064 = vmatpush3.bf16.msra.mxu1 %v1131_v43  ;;  %v1132_v52 = vld [vmem:[%s1670_s4] sm:$0xff]   ;;  %p1178_p0 = scmp.ne.s32.totalorder %s972_s25, %s1177_s26  ;;  %p1183_p2 = scmp.lt.s32.totalorder %s1177_s26, %s1177_s26 }
  0x30   :  { %1065 = vmatprep.subr.bf16.mxu1 %v1132_v52 }
  0x31   :  { %p1184_p3 = por %p1183_p2, %p1182_p1 }
  0x32   :  { %1031 = vmatpush3.bf16.msra.mxu0 %v1124_v57 }
  0x33   :  { %1032 = vmatprep.subr.bf16.mxu0 %v1125_v58  ;;  %1066 = vmatpush3.bf16.msra.mxu1 %v1132_v52  ;;  %p1185_p4 = pnand %p1184_p3, %p1178_p0 }
  0x34   :  { %1071 = vmatprep.subr.bf16.mxu1 %v1200_v16 }
  0x36   :  { %1033 = vmatpush3.bf16.msra.mxu0 %v1126_v59 }
  0x37   :  { %1034 = vmatprep.subr.bf16.mxu0 %v1127_v60 }
  0x3a   :  { %1035 = vmatpush3.bf16.msra.mxu0 %v1128_v61 }
  0x3b   :  { %1036 = vmatprep.subr.bf16.mxu0 %v1129_v62 }
  0x3e   :  { %1037 = vmatpush3.bf16.msra.mxu0 %v1130_v63 }
  0x83   :  { %v76_v5 = vpop.permute.xlu0 %75 }
  0x84   :  { %v129_v6 = vpop.permute.xlu1 %128  ;;  %vm86_vm11 = vcmp.eq.s32.totalorder %v1534_v1, %v76_v5  ;;  %vm87_vm13 = vcmp.eq.s32.totalorder %v1537_v4, %v76_v5 }
  0x85   :  { %vm139_vm12 = vcmp.eq.s32.totalorder %v1534_v1, %v129_v6  ;;  %vm140_vm14 = vcmp.eq.s32.totalorder %v1537_v4, %v129_v6 }
  0x86   :  { %vm147_vm0 = vmor %vm86_vm11, %vm139_vm12 }
  0x87   :  { %v79_v7 = vpop.permute.xlu0 %78  ;;  %vm148_vm4 = vmor %vm87_vm13, %vm140_vm14 }
  0x88   :  { %vm88_vm15 = vcmp.eq.s32.totalorder %v1534_v1, %v79_v7  ;;  %v132_v8 = vpop.permute.xlu1 %131  ;;  %vm89_vm6 = vcmp.eq.s32.totalorder %v1537_v4, %v79_v7 }
  0x89   :  { %vm141_vm2 = vcmp.eq.s32.totalorder %v1534_v1, %v132_v8  ;;  %vm142_vm3 = vcmp.eq.s32.totalorder %v1537_v4, %v132_v8 }
  0x8a   :  { %vm149_vm5 = vmor %vm88_vm15, %vm141_vm2 }
  0x8b   :  { %v177_v9 = vpop.permute.xlu0 %176  ;;  %vm150_vm8 = vmor %vm89_vm6, %vm142_vm3 }
  0x8c   :  { %vm187_vm9 = vcmp.eq.s32.totalorder %v1534_v1, %v177_v9  ;;  %vm188_vm10 = vcmp.eq.s32.totalorder %v1537_v4, %v177_v9  ;;  %v180_v10 = vpop.permute.xlu1 %179 }
  0x8d   :  { %vm195_vm7 = vmor %vm147_vm0, %vm187_vm9  ;;  %vm189_vm1 = vcmp.eq.s32.totalorder %v1534_v1, %v180_v10  ;;  %vm190_vm11 = vcmp.eq.s32.totalorder %v1537_v4, %v180_v10 }
  0x8e   :  { %vm196_vm12 = vmor %vm148_vm4, %vm188_vm10 }
  0x8f   :  { %vm197_vm13 = vmor %vm149_vm5, %vm189_vm1  ;;  %v238_v12 = vpop.permute.xlu0 %237 }
  0x90   :  { %vm198_vm14 = vmor %vm150_vm8, %vm190_vm11  ;;  %vm248_vm2 = vcmp.eq.s32.totalorder %v1534_v1, %v238_v12  ;;  %vm249_vm15 = vcmp.eq.s32.totalorder %v1537_v4, %v238_v12  ;;  %v241_v13 = vpop.permute.xlu1 %240  ;;  %v1133_v12 = vld [vmem:[%s1671_s5 + $0x8] sm:$0xff]  }
  0x91   :  { %vm256_vm6 = vmor %vm195_vm7, %vm248_vm2  ;;  %vm250_vm3 = vcmp.eq.s32.totalorder %v1534_v1, %v241_v13  ;;  %vm251_vm0 = vcmp.eq.s32.totalorder %v1537_v4, %v241_v13 }
  0x92   :  { %vm257_vm9 = vmor %vm196_vm12, %vm249_vm15 }
  0x93   :  { %vm258_vm4 = vmor %vm197_vm13, %vm250_vm3  ;;  %v299_v14 = vpop.permute.xlu0 %298 }
  0x94   :  { %vm259_vm10 = vmor %vm198_vm14, %vm251_vm0  ;;  %vm309_vm1 = vcmp.eq.s32.totalorder %v1534_v1, %v299_v14  ;;  %vm310_vm5 = vcmp.eq.s32.totalorder %v1537_v4, %v299_v14  ;;  %v302_v15 = vpop.permute.xlu1 %301  ;;  %vm1677_vm14 = vcmask 998400   ;;  %v1134_v14 = vld [vmem:[%s1671_s5] sm:$0xff]  }
  0x95   :  { %vm317_vm8 = vmor %vm256_vm6, %vm309_vm1  ;;  %vm311_vm11 = vcmp.eq.s32.totalorder %v1534_v1, %v302_v15  ;;  %vm312_vm2 = vcmp.eq.s32.totalorder %v1537_v4, %v302_v15  ;;  %v1006_v15 = vld [vmem:[%s1672_s6] ss:$0 sm:$0xff]  ;;  %s1204_s6 = smov 64  }
  0x96   :  { %vm318_vm7 = vmor %vm257_vm9, %vm310_vm5  ;;  %v979_v2 = vsel %vm317_vm8, 1.0, %v1200_v16 }
  0x97   :  { %vm319_vm12 = vmor %vm258_vm4, %vm311_vm11  ;;  %v82_v11 = vpop.permute.xlu0 %81  ;;  %v980_v17 = vsel %vm318_vm7, 1.0, %v1200_v16 }
  0x98   :  { %vm320_vm13 = vmor %vm259_vm10, %vm312_vm2  ;;  %v981_v18 = vsel %vm319_vm12, 1.0, %v1200_v16  ;;  %v85_v19 = vpop.permute.xlu1 %84  ;;  %vm90_vm15 = vcmp.eq.s32.totalorder %v1534_v1, %v82_v11  ;;  %vm91_vm0 = vcmp.eq.s32.totalorder %v1537_v4, %v82_v11 }
  0x99   :  { %v982_v20 = vsel %vm320_vm13, 1.0, %v1200_v16  ;;  %v341_v21 = vpack.c.bf16 %v981_v18, %v979_v2  ;;  %vm92_vm1 = vcmp.eq.s32.totalorder %v1534_v1, %v85_v19  ;;  %vm93_vm8 = vcmp.eq.s32.totalorder %v1537_v4, %v85_v19 }
  0x9a   :  { %v342_v23 = vpack.c.bf16 %v982_v20, %v980_v17 }
  0x9b   :  { %v135_v24 = vpop.permute.xlu0 %134 }
  0x9c   :  { %1004 = vmatprep.mubr.msk.bf16.mxu0 %vm1677_vm14, %v342_v23  ;;  %vm143_vm6 = vcmp.eq.s32.totalorder %v1534_v1, %v135_v24  ;;  %vm144_vm3 = vcmp.eq.s32.totalorder %v1537_v4, %v135_v24  ;;  %v138_v25 = vpop.permute.xlu1 %137 }
  0x9d   :  { %523 = vmatmul.mubr.bf16.vlgmr.msra.gmra.mxu0 %v341_v21  ;;  %vm151_vm9 = vmor %vm90_vm15, %vm143_vm6  ;;  %vm145_vm4 = vcmp.eq.s32.totalorder %v1534_v1, %v138_v25  ;;  %vm146_vm10 = vcmp.eq.s32.totalorder %v1537_v4, %v138_v25 }
  0x9e   :  { %vm152_vm5 = vmor %vm91_vm0, %vm144_vm3 }
  0x9f   :  { %vm153_vm11 = vmor %vm92_vm1, %vm145_vm4  ;;  %v183_v26 = vpop.permute.xlu0 %182 }
  0xa0   :  { %vm154_vm2 = vmor %vm93_vm8, %vm146_vm10  ;;  %vm191_vm7 = vcmp.eq.s32.totalorder %v1534_v1, %v183_v26  ;;  %vm192_vm12 = vcmp.eq.s32.totalorder %v1537_v4, %v183_v26  ;;  %v186_v27 = vpop.permute.xlu1 %185 }
  0xa1   :  { %vm199_vm13 = vmor %vm151_vm9, %vm191_vm7  ;;  %vm193_vm15 = vcmp.eq.s32.totalorder %v1534_v1, %v186_v27  ;;  %vm194_vm6 = vcmp.eq.s32.totalorder %v1537_v4, %v186_v27 }
  0xa2   :  { %vm200_vm14 = vmor %vm152_vm5, %vm192_vm12 }
  0xa3   :  { %vm201_vm0 = vmor %vm153_vm11, %vm193_vm15  ;;  %v244_v28 = vpop.permute.xlu0 %243 }
  0xa4   :  { %vm202_vm3 = vmor %vm154_vm2, %vm194_vm6  ;;  %vm252_vm1 = vcmp.eq.s32.totalorder %v1534_v1, %v244_v28  ;;  %vm253_vm4 = vcmp.eq.s32.totalorder %v1537_v4, %v244_v28  ;;  %v247_v29 = vpop.permute.xlu1 %246 }
  0xa5   :  { %vm260_vm10 = vmor %vm199_vm13, %vm252_vm1  ;;  %vm254_vm8 = vcmp.eq.s32.totalorder %v1534_v1, %v247_v29  ;;  %vm255_vm7 = vcmp.eq.s32.totalorder %v1537_v4, %v247_v29 }
  0xa6   :  { %vm261_vm9 = vmor %vm200_vm14, %vm253_vm4 }
  0xa7   :  { %vm262_vm5 = vmor %vm201_vm0, %vm254_vm8  ;;  %v305_v30 = vpop.permute.xlu0 %304  ;;  %vm1714_vm0 = vcmask 998400   ;;  %vm1202_vm8 = vmmov 0  }
  0xa8   :  { %vm263_vm12 = vmor %vm202_vm3, %vm255_vm7  ;;  %vm313_vm11 = vcmp.eq.s32.totalorder %v1534_v1, %v305_v30  ;;  %vm314_vm15 = vcmp.eq.s32.totalorder %v1537_v4, %v305_v30  ;;  %v308_v31 = vpop.permute.xlu1 %307  ;;  %vm568_vm3 = vcmask 130048   ;;  %vm1715_vm7 = vcmask 1040384  }
  0xa9   :  { %vm321_vm2 = vmor %vm260_vm10, %vm313_vm11  ;;  %vm315_vm6 = vcmp.eq.s32.totalorder %v1534_v1, %v308_v31  ;;  %vm316_vm1 = vcmp.eq.s32.totalorder %v1537_v4, %v308_v31  ;;  %vm593_vm10 = vcmask 261120  }
  0xaa   :  { %vm322_vm13 = vmor %vm261_vm9, %vm314_vm15  ;;  %v983_v32 = vsel %vm321_vm2, 1.0, %v1200_v16  ;;  %vm963_vm9 = vcmask 25600  }
  0xab   :  { %v984_v33 = vsel %vm322_vm13, 1.0, %v1200_v16  ;;  %vm323_vm4 = vmor %vm262_vm5, %vm315_vm6 }
  0xac   :  { %vm324_vm14 = vmor %vm263_vm12, %vm316_vm1  ;;  %v985_v34 = vsel %vm323_vm4, 1.0, %v1200_v16 }
  0xad   :  { %v986_v35 = vsel %vm324_vm14, 1.0, %v1200_v16  ;;  %v343_v36 = vpack.c.bf16 %v985_v34, %v983_v32 }
  0xae   :  { %v344_v37 = vpack.c.bf16 %v986_v35, %v984_v33 }
  0xb0   :  { %1005 = vmatprep.mubr.msk.bf16.mxu0 %vm1714_vm0, %v344_v37 }
  0xb1   :  { %531 = vmatmul.mubr.bf16.gmra.mxu0 %v343_v36 }
 0x15d   :  { %v1038_v38 = vpop.f32.mrf.mxu0 }
 0x15f   :  { %v1039_v39 = vpop.f32.mrf.mxu0 }
 0x160   :  { %v1040_v40 = vadd.f32 %v1039_v39, %v1038_v38 }
 0x161   :  { %v1041_v42 = vpop.f32.mrf.mxu0 }
 0x162   :  { %v525_v44 = vadd.f32 %v1040_v40, %v987_v41 }
 0x163   :  { %v1042_v22 = vpop.f32.mrf.mxu0 }
 0x164   :  { %v1043_v45 = vadd.f32 %v1042_v22, %v1041_v42  ;;  %v539_v47 = vmax.f32 %v525_v44, 0.0 }
 0x166   :  { %v528_v46 = vadd.f32 %v1043_v45, %v987_v41 }
 0x168   :  { %v540_v48 = vmax.f32 %v528_v46, 0.0 }
 0x16a   :  { %v1110_v49 = vpack.i.bf16 %v540_v48, %v539_v47 }
 0x16c   :  { %1111 = vrot.lane.b32.xlu1 %v1110_v49, %s1201_s14 }
 0x171   :  { %v1044_v50 = vpop.f32.mrf.mxu0 }
 0x173   :  { %v1045_v51 = vpop.f32.mrf.mxu0 }
 0x174   :  { %v1046_v53 = vadd.f32 %v1045_v51, %v1044_v50 }
 0x175   :  { %v1047_v54 = vpop.f32.mrf.mxu0 }
 0x176   :  { %v533_v56 = vadd.f32 %v1046_v53, %v987_v41 }
 0x177   :  { %v1048_v55 = vpop.f32.mrf.mxu0 }
 0x178   :  { %v1049_v57 = vadd.f32 %v1048_v55, %v1047_v54  ;;  %v541_v59 = vmax.f32 %v533_v56, 0.0 }
 0x17a   :  { %v536_v58 = vadd.f32 %v1049_v57, %v987_v41 }
 0x17c   :  { %v542_v60 = vmax.f32 %v536_v58, 0.0 }
 0x17e   :  { %v1105_v61 = vpack.i.bf16 %v542_v60, %v541_v59 }
 0x180   :  { %1106 = vrot.lane.b32.xlu0 %v1105_v61, %s1201_s14 }
 0x1de   :  { %v1112_v62 = vpop.permute.xlu1 %1111 }
 0x1df   :  { %v1114_v63 = vunpack.i.h.bf16 %v1112_v62  ;;  %v1113_v0 = vunpack.i.l.bf16 %v1112_v62 }
 0x1e1   :  { %v571_v6 = vsel %vm568_vm3, %v541_v59, %v1113_v0  ;;  %v572_v7 = vsel %vm568_vm3, %v542_v60, %v1114_v63 }
 0x1e2   :  { %v574_v13 = vpack.c.bf16 %v572_v7, %v571_v6 }
 0x1f2   :  { %v1107_v1 = vpop.permute.xlu0 %1106 }
 0x1f3   :  { %v1109_v4 = vunpack.i.h.bf16 %v1107_v1  ;;  %v1108_v5 = vunpack.i.l.bf16 %v1107_v1 }
 0x1f5   :  { %v569_v8 = vsel %vm568_vm3, %v539_v47, %v1108_v5  ;;  %v570_v9 = vsel %vm568_vm3, %v540_v48, %v1109_v4 }
 0x1f6   :  { %v573_v10 = vpack.c.bf16 %v570_v9, %v569_v8 }
 0x1f8   :  { %1067 = vmatprep.mubr.msk.bf16.mxu1 %vm593_vm10, %v573_v10 }
 0x1f9   :  { %1068 = vmatmul.mubr.msk.bf16.vlgmr.msra.gmra.mxu1 %vm593_vm10, %v574_v13 }
 0x1fa   :  { %1072 = vmatpush3.bf16.msra.mxu1 %v1133_v12  ;;  %1075 = vmatprep.mubr.msk.bf16.mxu1 %vm1202_vm8, %v1200_v16 }
 0x1fb   :  { %1073 = vmatprep.subr.bf16.mxu1 %v1200_v16 }
 0x1fe   :  { %1074 = vmatpush3.bf16.msra.mxu1 %v1134_v14 }
 0x1ff   :  { %1079 = vmatprep.subr.bf16.mxu1 %v1200_v16 }
 0x201   :  { %1076 = vmatmul.mubr.bf16.vlgmr.msra.gmra.mxu1 %v1199_v3 }
 0x202   :  { %1080 = vmatpush3.bf16.msra.mxu1 %v1133_v12  ;;  %1083 = vmatprep.mubr.msk.bf16.mxu1 %vm1202_vm8, %v1200_v16 }
 0x203   :  { %1081 = vmatprep.subr.bf16.mxu1 %v1200_v16 }
 0x206   :  { %1082 = vmatpush3.bf16.msra.mxu1 %v1134_v14 }
 0x207   :  { %1087 = vmatprep.subr.bf16.mxu1 %v1200_v16 }
 0x2b9   :  { %v1069_v2 = vpop.f32.mrf.mxu1 }
 0x2ba   :  { %v643_v11 = vadd.f32 %v1069_v2, %v1006_v15 }
 0x2bb   :  { %v634_v17 = vpop.f32.mrf.mxu1 }
 0x2bc   :  { %v635_v3 = vadd.f32 %v1006_v15, %v634_v17 }
 0x2bd   :  { %v1070_v18 = vpop.f32.mrf.mxu1 }
 0x2be   :  { %v646_v19 = vadd.f32 %v1070_v18, %v1006_v15 }
 0x2bf   :  { %v637_v20 = vpop.f32.mrf.mxu1 }
 0x2c0   :  { %v638_v25 = vadd.f32 %v1006_v15, %v637_v20 }
 0x2c1   :  { %v698_v21 = vpop.f32.mrf.mxu1 }
 0x2c2   :  { %v705_v23 = vadd.f32 %v698_v21, %v635_v3 }
 0x2c3   :  { %v1077_v24 = vpop.f32.mrf.mxu1 }
 0x2c4   :  { %1137 = vtanh.f32 %v705_v23  ;;  %v1013_v31 = vmul.f32 -1.442695, %v705_v23 }
 0x2c5   :  { %v701_v26 = vpop.f32.mrf.mxu1 }
 0x2c6   :  { %v706_v27 = vadd.f32 %v701_v26, %v638_v25  ;;  %v1135_v26 = vld [vmem:[%s1673_s7 + $0x8] sm:$0xff]  }
 0x2c7   :  { %v1078_v28 = vpop.f32.mrf.mxu1 }
 0x2c8   :  { %1139 = vtanh.f32 %v706_v27  ;;  %v1014_v32 = vmul.f32 -1.442695, %v706_v27  ;;  %v1136_v27 = vld [vmem:[%s1673_s7] sm:$0xff]  }
 0x2c9   :  { %1141 = vpow2.f32 %v1013_v31 }
 0x2ca   :  { %1143 = vpow2.f32 %v1014_v32 }
 0x2d1   :  { %v1138_v29 = vpop.eup %1137 }
 0x2d2   :  { %725 = vrot.lane.b32.xlu0 %v1138_v29, %s1203_s20 }
 0x2d5   :  { %v1140_v30 = vpop.eup %1139 }
 0x2d6   :  { %727 = vrot.lane.b32.xlu1 %v1140_v30, %s1203_s20  ;;  %v1142_v33 = vpop.eup %1141 }
 0x2d7   :  { %v713_v34 = vadd.f32 1.0, %v1142_v33  ;;  %v1144_v35 = vpop.eup %1143 }
 0x2d8   :  { %v714_v36 = vadd.f32 1.0, %v1144_v35 }
 0x2d9   :  { %1145 = vrcp.f32 %v713_v34 }
 0x2da   :  { %1147 = vrcp.f32 %v714_v36 }
 0x2e6   :  { %v1146_v37 = vpop.eup %1145 }
 0x2e7   :  { %v1148_v40 = vpop.eup %1147  ;;  %v721_v43 = vmul.f32 0.0, %v1146_v37 }
 0x2e8   :  { %v722_v45 = vmul.f32 0.0, %v1148_v40 }
 0x344   :  { %v726_v38 = vpop.permute.xlu0 %725 }
 0x345   :  { %v731_v39 = vmul.f32 %v1146_v37, %v726_v38 }
 0x347   :  { %735 = vrot.lane.b32.xlu0 %v731_v39, %s1203_s20 }
 0x348   :  { %v728_v41 = vpop.permute.xlu1 %727 }
 0x349   :  { %v732_v42 = vmul.f32 %v1148_v40, %v728_v41 }
 0x34b   :  { %737 = vrot.lane.b32.xlu1 %v732_v42, %s1203_s20 }
 0x3b9   :  { %v736_v22 = vpop.permute.xlu0 %735 }
 0x3ba   :  { %v741_v44 = vadd.f32 %v736_v22, %v721_v43 }
 0x3bc   :  { %1149 = vtanh.f32 %v741_v44 }
 0x3bd   :  { %v738_v46 = vpop.permute.xlu1 %737 }
 0x3be   :  { %v742_v47 = vadd.f32 %v738_v46, %v722_v45 }
 0x3c0   :  { %1151 = vtanh.f32 %v742_v47 }
 0x3c9   :  { %v1150_v48 = vpop.eup %1149 }
 0x3ca   :  { %747 = vrot.lane.b32.xlu0 %v1150_v48, %s1203_s20 }
 0x3cd   :  { %v1152_v49 = vpop.eup %1151 }
 0x3ce   :  { %749 = vrot.lane.b32.xlu1 %v1152_v49, %s1203_s20 }
 0x43c   :  { %v748_v50 = vpop.permute.xlu0 %747 }
 0x43d   :  { %v753_v52 = vmul.f32 %v1146_v37, %v748_v50 }
 0x440   :  { %v750_v51 = vpop.permute.xlu1 %749 }
 0x441   :  { %v754_v53 = vmul.f32 %v1148_v40, %v750_v51 }
 0x443   :  { %v755_v54 = vpack.c.bf16 %v754_v53, %v753_v52 }
 0x445   :  { %757 = vrot.lane.b32.xlu0 %v755_v54, %s1204_s6 }
 0x4b7   :  { %v758_v55 = vpop.permute.xlu0 %757 }
 0x4b8   :  { %1084 = vmatmul.mubr.msk.bf16.vlgmr.msra.gmra.mxu1 %vm593_vm10, %v758_v55 }
 0x4b9   :  { %1091 = vmatprep.mubr.msk.bf16.mxu1 %vm1202_vm8, %v1200_v16  ;;  %1088 = vmatpush3.bf16.msra.mxu1 %v1135_v26 }
 0x4ba   :  { %1089 = vmatprep.subr.bf16.mxu1 %v1200_v16 }
 0x4bd   :  { %1090 = vmatpush3.bf16.msra.mxu1 %v1136_v27 }
 0x578   :  { %v796_v56 = vpop.f32.mrf.mxu1 }
 0x579   :  { %v803_v57 = vadd.f32 %v796_v56, %v643_v11 }
 0x57a   :  { %v1085_v58 = vpop.f32.mrf.mxu1 }
 0x57b   :  { %1153 = vtanh.f32 %v803_v57  ;;  %v1016_v0 = vmul.f32 -1.442695, %v803_v57  ;;  %v1018_v58 = vld [vmem:[%s1674_s8] ss:$0 sm:$0xff] }
 0x57c   :  { %v799_v59 = vpop.f32.mrf.mxu1 }
 0x57d   :  { %v804_v60 = vadd.f32 %v799_v59, %v646_v19 }
 0x57e   :  { %v1086_v61 = vpop.f32.mrf.mxu1 }
 0x57f   :  { %1155 = vtanh.f32 %v804_v60  ;;  %v1017_v1 = vmul.f32 -1.442695, %v804_v60 }
 0x580   :  { %1157 = vpow2.f32 %v1016_v0 }
 0x581   :  { %1159 = vpow2.f32 %v1017_v1 }
 0x588   :  { %v1154_v62 = vpop.eup %1153 }
 0x589   :  { %823 = vrot.lane.b32.xlu1 %v1154_v62, %s1203_s20 }
 0x58c   :  { %v1156_v63 = vpop.eup %1155 }
 0x58d   :  { %825 = vrot.lane.b32.xlu0 %v1156_v63, %s1203_s20  ;;  %v1158_v4 = vpop.eup %1157 }
 0x58e   :  { %v811_v5 = vadd.f32 1.0, %v1158_v4  ;;  %v1160_v6 = vpop.eup %1159 }
 0x58f   :  { %v812_v7 = vadd.f32 1.0, %v1160_v6 }
 0x590   :  { %1161 = vrcp.f32 %v811_v5 }
 0x591   :  { %1163 = vrcp.f32 %v812_v7 }
 0x59d   :  { %v1162_v8 = vpop.eup %1161 }
 0x59e   :  { %v1164_v12 = vpop.eup %1163  ;;  %v819_v15 = vmul.f32 %v1162_v8, %v741_v44 }
 0x59f   :  { %v820_v17 = vmul.f32 %v1164_v12, %v742_v47 }
 0x5fb   :  { %v824_v9 = vpop.permute.xlu1 %823 }
 0x5fc   :  { %v829_v10 = vmul.f32 %v1162_v8, %v824_v9 }
 0x5fe   :  { %833 = vrot.lane.b32.xlu1 %v829_v10, %s1203_s20 }
 0x5ff   :  { %v826_v13 = vpop.permute.xlu0 %825 }
 0x600   :  { %v830_v14 = vmul.f32 %v1164_v12, %v826_v13 }
 0x602   :  { %835 = vrot.lane.b32.xlu0 %v830_v14, %s1203_s20 }
 0x670   :  { %v834_v2 = vpop.permute.xlu1 %833 }
 0x671   :  { %v839_v11 = vadd.f32 %v834_v2, %v819_v15 }
 0x673   :  { %1165 = vtanh.f32 %v839_v11 }
 0x674   :  { %v836_v18 = vpop.permute.xlu0 %835 }
 0x675   :  { %v840_v19 = vadd.f32 %v836_v18, %v820_v17 }
 0x677   :  { %1167 = vtanh.f32 %v840_v19 }
 0x680   :  { %v1166_v20 = vpop.eup %1165 }
 0x681   :  { %845 = vrot.lane.b32.xlu1 %v1166_v20, %s1203_s20 }
 0x684   :  { %v1168_v3 = vpop.eup %1167 }
 0x685   :  { %855 = vrot.lane.b32.xlu1 %v753_v52, %s1204_s6  ;;  %847 = vrot.lane.b32.xlu0 %v1168_v3, %s1203_s20 }
 0x689   :  { %857 = vrot.lane.b32.xlu0 %v754_v53, %s1204_s6 }
 0x6f3   :  { %v846_v21 = vpop.permute.xlu1 %845 }
 0x6f4   :  { %v851_v23 = vmul.f32 %v1162_v8, %v846_v21 }
 0x6f6   :  { %863 = vrot.lane.b32.xlu1 %v851_v23, %s1204_s6 }
 0x6f7   :  { %v848_v24 = vpop.permute.xlu0 %847  ;;  %v856_v28 = vpop.permute.xlu1 %855 }
 0x6f8   :  { %v852_v25 = vmul.f32 %v1164_v12, %v848_v24 }
 0x6fa   :  { %865 = vrot.lane.b32.xlu0 %v852_v25, %s1204_s6 }
 0x6fb   :  { %v858_v29 = vpop.permute.xlu0 %857 }
 0x768   :  { %v864_v30 = vpop.permute.xlu1 %863 }
 0x769   :  { %v869_v31 = vsel %vm568_vm3, %v856_v28, %v864_v30  ;;  %v871_v32 = vsel %vm568_vm3, %v864_v30, %v856_v28 }
 0x76a   :  { %1169 = vtanh.f32 %v869_v31 }
 0x76b   :  { %1171 = vtanh.f32 %v871_v32 }
 0x76c   :  { %v866_v33 = vpop.permute.xlu0 %865 }
 0x76d   :  { %v870_v34 = vsel %vm568_vm3, %v858_v29, %v866_v33  ;;  %v872_v35 = vsel %vm568_vm3, %v866_v33, %v858_v29 }
 0x76e   :  { %1173 = vtanh.f32 %v870_v34 }
 0x76f   :  { %1175 = vtanh.f32 %v872_v35 }
 0x777   :  { %v1170_v36 = vpop.eup %1169 }
 0x778   :  { %v1172_v37 = vpop.eup %1171  ;;  %v877_v39 = vsel %vm593_vm10, %v1170_v36, -inf }
 0x779   :  { %v886_v41 = vsel %vm593_vm10, %v1172_v37, -inf }
 0x77b   :  { %v1174_v16 = vpop.eup %1173 }
 0x77c   :  { %v1176_v38 = vpop.eup %1175  ;;  %v878_v40 = vsel %vm593_vm10, %v1174_v16, -inf }
 0x77d   :  { %v879_v42 = vmax.f32 %v877_v39, %v878_v40  ;;  %v887_v43 = vsel %vm593_vm10, %v1176_v38, -inf }
 0x77e   :  { %v888_v22 = vmax.f32 %v886_v41, %v887_v43 }
 0x77f   :  { %v880_v44 = vrot.slane %v879_v42, 4 }
 0x780   :  { %v889_v45 = vrot.slane %v888_v22, 4 }
 0x781   :  { %v881_v46 = vmax.f32 %v879_v42, %v880_v44 }
 0x782   :  { %v890_v47 = vmax.f32 %v888_v22, %v889_v45 }
 0x783   :  { %v882_v48 = vrot.slane %v881_v46, 2 }
 0x784   :  { %v891_v49 = vrot.slane %v890_v47, 2 }
 0x785   :  { %v883_v50 = vmax.f32 %v881_v46, %v882_v48 }
 0x786   :  { %v892_v51 = vmax.f32 %v890_v47, %v891_v49 }
 0x787   :  { %v884_v52 = vrot.slane %v883_v50, 1 }
 0x788   :  { %v893_v53 = vrot.slane %v892_v51, 1 }
 0x789   :  { %v885_v54 = vmax.f32 %v883_v50, %v884_v52 }
 0x78a   :  { %v894_v55 = vmax.f32 %v892_v51, %v893_v53 }
 0x78c   :  { %v895_v56 = vsel %vm1715_vm7, %v885_v54, %v894_v55 }
 0x78d   :  { %v896_v57 = vpack.c.bf16 %v895_v56, %v895_v56 }
 0x78f   :  { %1092 = vmatmul.mubr.msk.bf16.vlgmr.msra.gmra.mxu1 %vm593_vm10, %v896_v57 }
 0x84f   :  { %v957_v59 = vpop.f32.mrf.mxu1 }
 0x850   :  { %v958_v60 = vadd.f32 %v1018_v58, %v957_v59 }
 0x851   :  { %v1093_v61 = vpop.f32.mrf.mxu1 }
 0x852   :  { %964 = vst.msk [vmem:[#allocation2] sm:$0x3] %vm963_vm9, %v958_v60 }
 0x853   :  { %v960_v62 = vpop.f32.mrf.mxu1 }
 0x854   :  { %1188 = shalt.err (!%p1185_p4)
}
 0x855   :  { %974 = dma.vmem_to_hbm [thread:$0]  %s972_s25, 32, %s1675_s9, [#allocation3]   ;;  %v1094_v63 = vpop.f32.mrf.mxu1 }
 0x856   :  { %1197 = dma.done.wait [#allocation3], 32  }
 0x857   :  { %1198 = vsyncadd [#allocation3], 4294967264 }
 0x858   :  { %978 = vsyncpa [#allocation3], 1 }

</bundles_post_ra>
